<compile_context>
chip_gen: v5e
topology: v5e:2x2
jax: 0.10.0
libtpu: 0.0.40
codegen_flags: <defaults>
</compile_context>

<pallas_src>
import jax
import jax.numpy as jnp
from jax.experimental import pallas as pl
from jax.experimental.pallas import tpu as pltpu


# ----------------------------------------------------------------------------
# Pallas kernels
# ----------------------------------------------------------------------------
def _block_core(x_ref, w_ref, b_ref, g_ref, bt_ref):
    """Fused DownBlock2d: 4x4/s2/p1 conv as ONE K=16*Cin MXU matmul (input
    pre-folded on the XLA side) + bias + InstanceNorm2d + LeakyReLU(0.2).

    x_ref:  (1, tb, HW, K)   bf16   folded conv input, K = 16*Cin
    w_ref:  (1, K, Cout)     bf16
    b_ref / g_ref / bt_ref: (1, 1, Cout) f32
    returns y: (tb, HW, Cout) f32 (post-norm, post-activation)
    """
    _, tb, HW, K = x_ref.shape
    Cout = w_ref.shape[-1]

    x = x_ref[0].reshape(tb * HW, K)                       # bf16 feeds the MXU
    conv = jnp.dot(x, w_ref[0], preferred_element_type=jnp.float32)
    conv = conv + b_ref[0]                                 # (tb*HW, Cout) f32
    c3 = conv.reshape(tb, HW, Cout)

    # InstanceNorm2d: biased variance over spatial positions, per sample/channel,
    # stats in f32, eps = 1e-5 (PyTorch default).  Var clamped at 0 against
    # cancellation in the one-pass E[x^2] - mean^2 form.
    mean = jnp.mean(c3, axis=1, keepdims=True)
    var = jnp.maximum(jnp.mean(c3 * c3, axis=1, keepdims=True) - mean * mean, 0.0)
    y = (c3 - mean) * jax.lax.rsqrt(var + 1e-5)
    y = y * g_ref[0] + bt_ref[0]
    return jnp.where(y >= 0.0, y, 0.2 * y)                 # LeakyReLU(0.2)


def _downblock_kernel(x_ref, w_ref, b_ref, g_ref, bt_ref, feat_ref):
    y = _block_core(x_ref, w_ref, b_ref, g_ref, bt_ref)
    # Lane-dense store: channel-major (NCHW-like) layout, minor dim = Ho*Wo.
    feat_ref[0] = jnp.swapaxes(y, 1, 2).astype(feat_ref.dtype)


def _downblock_head_kernel(x_ref, w_ref, b_ref, g_ref, bt_ref, wh_ref, bh_ref,
                           feat_ref, pred_ref):
    """Last down-block with the spectral-normalized 1x1 prediction head fused in.
    The head is a VPU multiply + lane reduce over Cout (no N=1 MXU matmul) and
    its output is stored lane-dense as (tb, 1, HW)."""
    y = _block_core(x_ref, w_ref, b_ref, g_ref, bt_ref)
    feat_ref[0] = jnp.swapaxes(y, 1, 2).astype(feat_ref.dtype)

    pred = jnp.sum(y * wh_ref[0], axis=-1) + bh_ref[0]     # (tb, HW) f32
    pred_ref[0] = pred[:, None, :]


# ----------------------------------------------------------------------------
# XLA-side layout glue (bf16, fused by jit): fold conv input, regroup weights
# ----------------------------------------------------------------------------
def _fold_conv_input(x):
    """(S, B, C, H, W) NCHW -> (S, B, Ho*Wo, 16*C): zero-pad 1 px, fold the full
    4x4 receptive field of the stride-2 conv into channels.
    k order = (cell=2*dh+dw, ph, pw, c) with kh = 2*dh+ph, kw = 2*dw+pw."""
    S, B, C, H, W = x.shape
    assert H % 2 == 0 and W % 2 == 0, "Conv2d(k=4,s=2,p=1) fold assumes even H, W"
    Ho, Wo = H // 2, W // 2
    Hq, Wq = Ho + 1, Wo + 1
    xp = jnp.pad(x, ((0, 0), (0, 0), (0, 0), (1, 1), (1, 1)))
    s2d = xp.reshape(S, B, C, Hq, 2, Wq, 2)
    s2d = jnp.transpose(s2d, (0, 1, 3, 5, 4, 6, 2))        # (S,B,Hq,Wq,ph,pw,C)
    cells = [s2d[:, :, dh:dh + Ho, dw:dw + Wo] for dh in (0, 1) for dw in (0, 1)]
    xcol = jnp.stack(cells, axis=4)                        # (S,B,Ho,Wo,4,2,2,C)
    return xcol.reshape(S, B, Ho * Wo, 16 * C)


def _regroup_conv_weight(w):
    """(S, Cout, Cin, 4, 4) torch layout -> (S, 16*Cin, Cout), matching the
    fold's k order (dh, dw, ph, pw, c)."""
    S, Cout, Cin = w.shape[:3]
    wr = w.reshape(S, Cout, Cin, 2, 2, 2, 2)               # (S, f, c, dh, ph, dw, pw)
    wm = jnp.transpose(wr, (0, 3, 5, 4, 6, 2, 1))          # (S, dh, dw, ph, pw, c, f)
    return wm.reshape(S, 16 * Cin, Cout)


# ----------------------------------------------------------------------------
# VMEM budgeting (generation-aware) and batch-tile selection
# ----------------------------------------------------------------------------
def _vmem_limit_bytes():
    phys = 64 * 1024 * 1024                                # conservative fallback (v7x)
    try:
        info = pltpu.get_tpu_info()
        phys = int(getattr(info, "vmem_capacity_bytes", phys) or phys)
    except Exception:
        pass
    # ~48 MiB on v7x (64 MiB physical), ~96 MiB on v5e/v6e (128 MiB physical).
    return min(phys * 3 // 4, 100 * 1024 * 1024)


def _choose_tb(B, per_sample_bytes, budget):
    """Largest divisor of B whose per-step footprint fits the budget, while
    keeping >= 2 batch tiles (when B > 1) so the pipeline can overlap DMA."""
    best = 1
    for tb in range(1, B + 1):
        if B % tb:
            continue
        if tb * per_sample_bytes <= budget and (B // tb >= 2 or B == 1):
            best = tb
    return best


# ----------------------------------------------------------------------------
# pallas_call wrapper: one fused block, grid = (scale, batch tile)
# ----------------------------------------------------------------------------
def down_block_apply(xcol, wm, b, gamma, beta, B, Ho, Wo, head=None):
    """xcol: (Sx, B, HW, K) bf16 (Sx == 1 when the raw input is shared by scales)
    wm: (S, K, Cout) bf16 ; b/gamma/beta: (S, 1, Cout) f32
    head: optional (w_sn (S, 1, Cout) f32, bias (S, 1, 1) f32)
    returns feat (S, B, Cout, HW) bf16 [, pred (S, B, 1, HW) f32]."""
    Sx, _, HW, K = xcol.shape
    S, _, Cout = wm.shape
    assert HW == Ho * Wo

    vmem_limit = _vmem_limit_bytes()
    per_sample = HW * (4 * K + 24 * Cout)                  # rough bytes/sample in VMEM
    tb = _choose_tb(B, per_sample, vmem_limit // 2)
    nb = B // tb

    x_map = (lambda s, bb: (0, bb, 0, 0)) if Sx == 1 else (lambda s, bb: (s, bb, 0, 0))
    in_specs = [
        pl.BlockSpec((1, tb, HW, K), x_map),
        pl.BlockSpec((1, K, Cout), lambda s, bb: (s, 0, 0)),
        pl.BlockSpec((1, 1, Cout), lambda s, bb: (s, 0, 0)),
        pl.BlockSpec((1, 1, Cout), lambda s, bb: (s, 0, 0)),
        pl.BlockSpec((1, 1, Cout), lambda s, bb: (s, 0, 0)),
    ]
    feat_shape = jax.ShapeDtypeStruct((S, B, Cout, HW), jnp.bfloat16)
    feat_spec = pl.BlockSpec((1, tb, Cout, HW), lambda s, bb: (s, bb, 0, 0))

    flops = 2 * S * B * HW * K * Cout
    bytes_accessed = (S * B * HW * K * 2            # folded activations (bf16)
                      + S * K * Cout * 2            # weights (bf16)
                      + 3 * S * Cout * 4            # bias / gamma / beta
                      + S * B * HW * Cout * 2)      # feature output (bf16)
    if head is not None:
        flops += 2 * S * B * HW * Cout
        bytes_accessed += S * B * HW * 4
    cost = pl.CostEstimate(flops=flops, transcendentals=S * B * Cout,
                           bytes_accessed=bytes_accessed)
    cparams = pltpu.CompilerParams(
        dimension_semantics=("parallel", "parallel"),      # scales x batch tiles
        vmem_limit_bytes=vmem_limit)

    if head is None:
        return pl.pallas_call(
            _downblock_kernel, grid=(S, nb),
            in_specs=in_specs, out_specs=feat_spec, out_shape=feat_shape,
            compiler_params=cparams, cost_estimate=cost,
        )(xcol, wm, b, gamma, beta)

    wh, bh = head
    in_specs = in_specs + [
        pl.BlockSpec((1, 1, Cout), lambda s, bb: (s, 0, 0)),
        pl.BlockSpec((1, 1, 1), lambda s, bb: (s, 0, 0)),
    ]
    pred_shape = jax.ShapeDtypeStruct((S, B, 1, HW), jnp.float32)
    pred_spec = pl.BlockSpec((1, tb, 1, HW), lambda s, bb: (s, bb, 0, 0))
    return pl.pallas_call(
        _downblock_head_kernel, grid=(S, nb),
        in_specs=in_specs, out_specs=(feat_spec, pred_spec),
        out_shape=(feat_shape, pred_shape),
        compiler_params=cparams, cost_estimate=cost,
    )(xcol, wm, b, gamma, beta, wh, bh)


# ----------------------------------------------------------------------------
# Forward pass (mirrors MultiScaleDiscriminator / Discriminator)
# ----------------------------------------------------------------------------
def multiscale_discriminator_forward(params, x_nchw):
    blocks = params["down_blocks"]
    S = blocks[0]["w"].shape[0]
    B = x_nchw.shape[0]

    cur = x_nchw.astype(jnp.bfloat16)[None]                # (1, B, C, H, W) NCHW bf16
    feats, pred = [], None
    for bi, blk in enumerate(blocks):
        _, _, _, Hc, Wc = cur.shape
        Ho, Wo = Hc // 2, Wc // 2
        xcol = _fold_conv_input(cur)                       # (Sx, B, Ho*Wo, 16*Cin) bf16
        wm = _regroup_conv_weight(blk["w"]).astype(jnp.bfloat16)
        Cout = wm.shape[-1]
        head = ((params["conv"]["w_sn"], params["conv"]["b"])
                if bi == len(blocks) - 1 else None)
        out = down_block_apply(xcol, wm, blk["b"], blk["gamma"], blk["beta"],
                               B, Ho, Wo, head=head)
        if head is not None:
            feat, pred = out
        else:
            feat = out
        cur = feat.reshape(S, B, Cout, Ho, Wo)             # NCHW, bf16 between blocks
        feats.append(cur)

    HoL, WoL = feats[-1].shape[-2], feats[-1].shape[-1]
    pred5 = pred.reshape(S, B, 1, HoL, WoL)
    out_dict = {}
    for s in range(S):
        out_dict["feature_maps_" + str(s)] = [f[s].astype(jnp.float32) for f in feats]
        out_dict["prediction_map_" + str(s)] = pred5[s]
    return out_dict


# ----------------------------------------------------------------------------
# Parameter construction (deterministic, synthetic; weights differ per scale)
# ----------------------------------------------------------------------------
def init_multiscale_params(key, input_nc, ndf, n_layers_d, num_d, max_features=512):
    down_blocks = []
    in_c = input_nc
    for i in range(n_layers_d):
        out_c = min(max_features, ndf * 2 ** (i + 1))
        key, kw, kb = jax.random.split(key, 3)
        down_blocks.append({
            "w": 0.02 * jax.random.normal(kw, (num_d, out_c, in_c, 4, 4), jnp.float32),
            "b": 0.01 * jax.random.normal(kb, (num_d, 1, out_c), jnp.float32),
            # InstanceNorm affine default init: gamma=1, beta=0
            "gamma": jnp.ones((num_d, 1, out_c), jnp.float32),
            "beta": jnp.zeros((num_d, 1, out_c), jnp.float32),
        })
        in_c = out_c
    key, kw, kb = jax.random.split(key, 3)
    w_head = 0.02 * jax.random.normal(kw, (num_d, 1, in_c), jnp.float32)
    # Spectral norm of a rank-1 (single-output-channel) weight == its L2 norm,
    # so normalize exactly (parameter setup, plain JAX).
    sigma = jnp.sqrt(jnp.sum(w_head ** 2, axis=(1, 2), keepdims=True)) + 1e-12
    return {
        "down_blocks": down_blocks,
        "conv": {"w_sn": w_head / sigma,
                 "b": 0.01 * jax.random.normal(kb, (num_d, 1, 1), jnp.float32)},
    }


# ----------------------------------------------------------------------------
# Pure-JAX reference (matching bf16 rounding between blocks) for a numerics check
# ----------------------------------------------------------------------------
def reference_forward(params, x_nchw):
    blocks = params["down_blocks"]
    S = blocks[0]["w"].shape[0]
    out = {}
    x0 = jnp.transpose(x_nchw, (0, 2, 3, 1)).astype(jnp.bfloat16)   # NHWC bf16
    for s in range(S):
        cur, fmaps, y32 = x0, [], None
        for blk in blocks:
            w = blk["w"][s].astype(jnp.bfloat16)                     # (Cout,Cin,4,4)
            conv = jax.lax.conv_general_dilated(
                cur, jnp.transpose(w, (2, 3, 1, 0)),
                window_strides=(2, 2), padding=((1, 1), (1, 1)),
                dimension_numbers=("NHWC", "HWIO", "NHWC"),
                preferred_element_type=jnp.float32)
            conv = conv + blk["b"][s].reshape(1, 1, 1, -1)
            mean = jnp.mean(conv, axis=(1, 2), keepdims=True)
            var = jnp.maximum(
                jnp.mean(conv * conv, axis=(1, 2), keepdims=True) - mean * mean, 0.0)
            y32 = (conv - mean) * jax.lax.rsqrt(var + 1e-5)
            y32 = (y32 * blk["gamma"][s].reshape(1, 1, 1, -1)
                   + blk["beta"][s].reshape(1, 1, 1, -1))
            y32 = jnp.where(y32 >= 0.0, y32, 0.2 * y32)
            cur = y32.astype(jnp.bfloat16)                           # bf16 between blocks
            fmaps.append(jnp.transpose(cur, (0, 3, 1, 2)).astype(jnp.float32))
        wh = params["conv"]["w_sn"][s].reshape(1, 1, 1, -1)          # f32
        pred = jnp.sum(y32 * wh, axis=-1) + params["conv"]["b"][s].reshape(1, 1, 1)
        out["feature_maps_" + str(s)] = fmaps
        out["prediction_map_" + str(s)] = pred[:, None, :, :]
    return out


# ----------------------------------------------------------------------------
if __name__ == "__main__":
    # MultiScaleDiscriminator(input_nc=3, ndf=8, n_layers_d=2, num_d=2, 'zeros')
    input_nc, ndf, n_layers_d, num_d = 3, 8, 2, 2
    B, H, W = 2, 32, 32

    key = jax.random.PRNGKey(0)
    kx, kp = jax.random.split(key)
    x = jax.random.normal(kx, (B, input_nc, H, W), jnp.float32)      # NCHW input
    params = init_multiscale_params(kp, input_nc, ndf, n_layers_d, num_d)

    forward = jax.jit(multiscale_discriminator_forward)
    out = jax.block_until_ready(forward(params, x))

    # shape checks (each block halves the spatial dims)
    assert out["prediction_map_0"].shape == (B, 1, H // 4, W // 4)
    assert out["feature_maps_1"][0].shape == (B, min(512, ndf * 2), H // 2, W // 2)
    assert out["feature_maps_1"][1].shape == (B, min(512, ndf * 4), H // 4, W // 4)

    # numerics check against a pure-JAX reference with matching bf16 rounding
    ref = reference_forward(params, x)
    for s in range(num_d):
        for a, r in zip(out["feature_maps_" + str(s)], ref["feature_maps_" + str(s)]):
            assert jnp.allclose(a, r, atol=2e-2, rtol=2e-2), \
                float(jnp.max(jnp.abs(a - r)))
        pa, pr = out["prediction_map_" + str(s)], ref["prediction_map_" + str(s)]
        assert jnp.allclose(pa, pr, atol=2e-2, rtol=2e-2), \
            float(jnp.max(jnp.abs(pa - pr)))

    print("KERNEL_OK")
</pallas_src>

<mosaic_0001>
module attributes {stable_mosaic.version = 11 : i64} {
  func.func @_downblock_kernel(%arg0: i32, %arg1: i32, %arg2: memref<1x1x256x48xbf16, #tpu.memory_space<vmem>>, %arg3: memref<1x48x16xbf16, #tpu.memory_space<vmem>>, %arg4: memref<1x1x16xf32, #tpu.memory_space<vmem>>, %arg5: memref<1x1x16xf32, #tpu.memory_space<vmem>>, %arg6: memref<1x1x16xf32, #tpu.memory_space<vmem>>, %arg7: memref<1x1x16x256xbf16, #tpu.memory_space<vmem>>) attributes {dimension_semantics = [#tpu.dimension_semantics<parallel>, #tpu.dimension_semantics<parallel>], iteration_bounds = array<i64: 2, 2>, scalar_prefetch = 0 : i64, scratch_operands = 0 : i64, tpu.core_type = #tpu.core_type<tc>, window_params = [{transform_indices = @transform_0, window_bounds = array<i64: 1, 1, 256, 48>}, {transform_indices = @transform_1, window_bounds = array<i64: 1, 48, 16>}, {transform_indices = @transform_2, window_bounds = array<i64: 1, 1, 16>}, {transform_indices = @transform_3, window_bounds = array<i64: 1, 1, 16>}, {transform_indices = @transform_4, window_bounds = array<i64: 1, 1, 16>}, {transform_indices = @transform_5, window_bounds = array<i64: 1, 1, 16, 256>}]} {
    %c0 = arith.constant 0 : index
    %c0_0 = arith.constant 0 : index
    %c0_1 = arith.constant 0 : index
    %c0_2 = arith.constant 0 : index
    %0 = vector.load %arg2[%c0, %c0_0, %c0_1, %c0_2] : memref<1x1x256x48xbf16, #tpu.memory_space<vmem>>, vector<1x1x256x48xbf16>
    %1 = vector.shape_cast %0 : vector<1x1x256x48xbf16> to vector<1x256x48xbf16>
    %2 = vector.shape_cast %1 : vector<1x256x48xbf16> to vector<256x48xbf16>
    %c0_3 = arith.constant 0 : index
    %c0_4 = arith.constant 0 : index
    %c0_5 = arith.constant 0 : index
    %3 = vector.load %arg3[%c0_3, %c0_4, %c0_5] : memref<1x48x16xbf16, #tpu.memory_space<vmem>>, vector<1x48x16xbf16>
    %4 = vector.shape_cast %3 : vector<1x48x16xbf16> to vector<48x16xbf16>
    %cst = arith.constant dense<0.000000e+00> : vector<256x16xf32>
    %5 = tpu.matmul %2, %4, %cst {dimension_numbers = #tpu.dot_dimension_numbers<[1], [0], [0], [1], [0, 0, 1, 1], [], []>} : vector<256x48xbf16>, vector<48x16xbf16>, vector<256x16xf32> -> vector<256x16xf32>
    %c0_6 = arith.constant 0 : index
    %c0_7 = arith.constant 0 : index
    %c0_8 = arith.constant 0 : index
    %6 = vector.load %arg4[%c0_6, %c0_7, %c0_8] : memref<1x1x16xf32, #tpu.memory_space<vmem>>, vector<1x1x16xf32>
    %7 = vector.shape_cast %6 : vector<1x1x16xf32> to vector<1x16xf32>
    %8 = vector.broadcast %7 : vector<1x16xf32> to vector<256x16xf32>
    %9 = arith.addf %5, %8 : vector<256x16xf32>
    %10 = vector.shape_cast %9 : vector<256x16xf32> to vector<1x256x16xf32>
    %cst_9 = arith.constant dense<0.000000e+00> : vector<1x16xf32>
    %11 = vector.multi_reduction <add>, %10, %cst_9 [1] : vector<1x256x16xf32> to vector<1x16xf32>
    %12 = vector.shape_cast %11 : vector<1x16xf32> to vector<1x1x16xf32>
    %cst_10 = arith.constant 2.560000e+02 : f32
    %13 = vector.broadcast %cst_10 : f32 to vector<1x1x16xf32>
    %14 = arith.divf %12, %13 : vector<1x1x16xf32>
    %15 = arith.mulf %10, %10 : vector<1x256x16xf32>
    %cst_11 = arith.constant dense<0.000000e+00> : vector<1x16xf32>
    %16 = vector.multi_reduction <add>, %15, %cst_11 [1] : vector<1x256x16xf32> to vector<1x16xf32>
    %17 = vector.shape_cast %16 : vector<1x16xf32> to vector<1x1x16xf32>
    %cst_12 = arith.constant 2.560000e+02 : f32
    %18 = vector.broadcast %cst_12 : f32 to vector<1x1x16xf32>
    %19 = arith.divf %17, %18 : vector<1x1x16xf32>
    %20 = arith.mulf %14, %14 : vector<1x1x16xf32>
    %21 = arith.subf %19, %20 : vector<1x1x16xf32>
    %cst_13 = arith.constant 0.000000e+00 : f32
    %22 = vector.broadcast %cst_13 : f32 to vector<1x1x16xf32>
    %23 = arith.maximumf %21, %22 : vector<1x1x16xf32>
    %24 = vector.broadcast %14 : vector<1x1x16xf32> to vector<1x256x16xf32>
    %25 = arith.subf %10, %24 : vector<1x256x16xf32>
    %cst_14 = arith.constant 9.99999974E-6 : f32
    %26 = vector.broadcast %cst_14 : f32 to vector<1x1x16xf32>
    %27 = arith.addf %23, %26 : vector<1x1x16xf32>
    %28 = math.rsqrt %27 : vector<1x1x16xf32>
    %29 = vector.broadcast %28 : vector<1x1x16xf32> to vector<1x256x16xf32>
    %30 = arith.mulf %25, %29 : vector<1x256x16xf32>
    %c0_15 = arith.constant 0 : index
    %c0_16 = arith.constant 0 : index
    %c0_17 = arith.constant 0 : index
    %31 = vector.load %arg5[%c0_15, %c0_16, %c0_17] : memref<1x1x16xf32, #tpu.memory_space<vmem>>, vector<1x1x16xf32>
    %32 = vector.shape_cast %31 : vector<1x1x16xf32> to vector<1x16xf32>
    %33 = vector.shape_cast %32 : vector<1x16xf32> to vector<1x1x16xf32>
    %34 = vector.broadcast %33 : vector<1x1x16xf32> to vector<1x256x16xf32>
    %35 = arith.mulf %30, %34 : vector<1x256x16xf32>
    %c0_18 = arith.constant 0 : index
    %c0_19 = arith.constant 0 : index
    %c0_20 = arith.constant 0 : index
    %36 = vector.load %arg6[%c0_18, %c0_19, %c0_20] : memref<1x1x16xf32, #tpu.memory_space<vmem>>, vector<1x1x16xf32>
    %37 = vector.shape_cast %36 : vector<1x1x16xf32> to vector<1x16xf32>
    %38 = vector.shape_cast %37 : vector<1x16xf32> to vector<1x1x16xf32>
    %39 = vector.broadcast %38 : vector<1x1x16xf32> to vector<1x256x16xf32>
    %40 = arith.addf %35, %39 : vector<1x256x16xf32>
    %cst_21 = arith.constant 0.000000e+00 : f32
    %41 = vector.broadcast %cst_21 : f32 to vector<1x256x16xf32>
    %42 = arith.cmpf oge, %40, %41 : vector<1x256x16xf32>
    %cst_22 = arith.constant 2.000000e-01 : f32
    %43 = vector.broadcast %cst_22 : f32 to vector<1x256x16xf32>
    %44 = arith.mulf %43, %40 : vector<1x256x16xf32>
    %45 = arith.select %42, %40, %44 : vector<1x256x16xi1>, vector<1x256x16xf32>
    %46 = tpu.transpose %45, [0, 2, 1] : vector<1x256x16xf32> -> vector<1x16x256xf32>
    %47 = arith.truncf %46 : vector<1x16x256xf32> to vector<1x16x256xbf16>
    %c0_23 = arith.constant 0 : index
    %c0_24 = arith.constant 0 : index
    %c0_25 = arith.constant 0 : index
    %c0_26 = arith.constant 0 : index
    %48 = vector.load %arg7[%c0_23, %c0_24, %c0_25, %c0_26] : memref<1x1x16x256xbf16, #tpu.memory_space<vmem>>, vector<1x1x16x256xbf16>
    %49 = vector.shape_cast %48 : vector<1x1x16x256xbf16> to vector<1x16x256xbf16>
    %50 = vector.shape_cast %47 : vector<1x16x256xbf16> to vector<1x1x16x256xbf16>
    tpu.vector_store %arg7[%c0_23, %c0_24, %c0_25, %c0_26], %50 {strides = array<i32>} : memref<1x1x16x256xbf16, #tpu.memory_space<vmem>>, vector<1x1x16x256xbf16>,
    return
  }
  func.func @transform_0(%arg0: i32, %arg1: i32) -> (i32, i32, i32, i32) {
    %c0_i32 = arith.constant 0 : i32
    %c0_i32_0 = arith.constant 0 : i32
    %c0_i32_1 = arith.constant 0 : i32
    %c0_i32_2 = arith.constant 0 : i32
    return %c0_i32, %arg1, %c0_i32_0, %c0_i32_1 : i32, i32, i32, i32
  }
  func.func @transform_1(%arg0: i32, %arg1: i32) -> (i32, i32, i32) {
    %c0_i32 = arith.constant 0 : i32
    %c0_i32_0 = arith.constant 0 : i32
    %c0_i32_1 = arith.constant 0 : i32
    return %arg0, %c0_i32, %c0_i32_0 : i32, i32, i32
  }
  func.func @transform_2(%arg0: i32, %arg1: i32) -> (i32, i32, i32) {
    %c0_i32 = arith.constant 0 : i32
    %c0_i32_0 = arith.constant 0 : i32
    %c0_i32_1 = arith.constant 0 : i32
    return %arg0, %c0_i32, %c0_i32_0 : i32, i32, i32
  }
  func.func @transform_3(%arg0: i32, %arg1: i32) -> (i32, i32, i32) {
    %c0_i32 = arith.constant 0 : i32
    %c0_i32_0 = arith.constant 0 : i32
    %c0_i32_1 = arith.constant 0 : i32
    return %arg0, %c0_i32, %c0_i32_0 : i32, i32, i32
  }
  func.func @transform_4(%arg0: i32, %arg1: i32) -> (i32, i32, i32) {
    %c0_i32 = arith.constant 0 : i32
    %c0_i32_0 = arith.constant 0 : i32
    %c0_i32_1 = arith.constant 0 : i32
    return %arg0, %c0_i32, %c0_i32_0 : i32, i32, i32
  }
  func.func @transform_5(%arg0: i32, %arg1: i32) -> (i32, i32, i32, i32) {
    %c0_i32 = arith.constant 0 : i32
    %c0_i32_0 = arith.constant 0 : i32
    %c0_i32_1 = arith.constant 0 : i32
    return %arg0, %arg1, %c0_i32, %c0_i32_0 : i32, i32, i32, i32
  }
}

module attributes {stable_mosaic.version = 11 : i64} {
  func.func @_downblock_head_kernel(%arg0: i32, %arg1: i32, %arg2: memref<1x1x64x256xbf16, #tpu.memory_space<vmem>>, %arg3: memref<1x256x32xbf16, #tpu.memory_space<vmem>>, %arg4: memref<1x1x32xf32, #tpu.memory_space<vmem>>, %arg5: memref<1x1x32xf32, #tpu.memory_space<vmem>>, %arg6: memref<1x1x32xf32, #tpu.memory_space<vmem>>, %arg7: memref<1x1x32xf32, #tpu.memory_space<vmem>>, %arg8: memref<1x1x1xf32, #tpu.memory_space<vmem>>, %arg9: memref<1x1x32x64xbf16, #tpu.memory_space<vmem>>, %arg10: memref<1x1x1x64xf32, #tpu.memory_space<vmem>>) attributes {dimension_semantics = [#tpu.dimension_semantics<parallel>, #tpu.dimension_semantics<parallel>], iteration_bounds = array<i64: 2, 2>, scalar_prefetch = 0 : i64, scratch_operands = 0 : i64, tpu.core_type = #tpu.core_type<tc>, window_params = [{transform_indices = @transform_0, window_bounds = array<i64: 1, 1, 64, 256>}, {transform_indices = @transform_1, window_bounds = array<i64: 1, 256, 32>}, {transform_indices = @transform_2, window_bounds = array<i64: 1, 1, 32>}, {transform_indices = @transform_3, window_bounds = array<i64: 1, 1, 32>}, {transform_indices = @transform_4, window_bounds = array<i64: 1, 1, 32>}, {transform_indices = @transform_5, window_bounds = array<i64: 1, 1, 32>}, {transform_indices = @transform_6, window_bounds = array<i64: 1, 1, 1>}, {transform_indices = @transform_7, window_bounds = array<i64: 1, 1, 32, 64>}, {transform_indices = @transform_8, window_bounds = array<i64: 1, 1, 1, 64>}]} {
    %c0 = arith.constant 0 : index
    %c0_0 = arith.constant 0 : index
    %c0_1 = arith.constant 0 : index
    %c0_2 = arith.constant 0 : index
    %0 = vector.load %arg2[%c0, %c0_0, %c0_1, %c0_2] : memref<1x1x64x256xbf16, #tpu.memory_space<vmem>>, vector<1x1x64x256xbf16>
    %1 = vector.shape_cast %0 : vector<1x1x64x256xbf16> to vector<1x64x256xbf16>
    %2 = vector.shape_cast %1 : vector<1x64x256xbf16> to vector<64x256xbf16>
    %c0_3 = arith.constant 0 : index
    %c0_4 = arith.constant 0 : index
    %c0_5 = arith.constant 0 : index
    %3 = vector.load %arg3[%c0_3, %c0_4, %c0_5] : memref<1x256x32xbf16, #tpu.memory_space<vmem>>, vector<1x256x32xbf16>
    %4 = vector.shape_cast %3 : vector<1x256x32xbf16> to vector<256x32xbf16>
    %cst = arith.constant dense<0.000000e+00> : vector<64x32xf32>
    %5 = tpu.matmul %2, %4, %cst {dimension_numbers = #tpu.dot_dimension_numbers<[1], [0], [0], [1], [0, 0, 1, 1], [], []>} : vector<64x256xbf16>, vector<256x32xbf16>, vector<64x32xf32> -> vector<64x32xf32>
    %c0_6 = arith.constant 0 : index
    %c0_7 = arith.constant 0 : index
    %c0_8 = arith.constant 0 : index
    %6 = vector.load %arg4[%c0_6, %c0_7, %c0_8] : memref<1x1x32xf32, #tpu.memory_space<vmem>>, vector<1x1x32xf32>
    %7 = vector.shape_cast %6 : vector<1x1x32xf32> to vector<1x32xf32>
    %8 = vector.broadcast %7 : vector<1x32xf32> to vector<64x32xf32>
    %9 = arith.addf %5, %8 : vector<64x32xf32>
    %10 = vector.shape_cast %9 : vector<64x32xf32> to vector<1x64x32xf32>
    %cst_9 = arith.constant dense<0.000000e+00> : vector<1x32xf32>
    %11 = vector.multi_reduction <add>, %10, %cst_9 [1] : vector<1x64x32xf32> to vector<1x32xf32>
    %12 = vector.shape_cast %11 : vector<1x32xf32> to vector<1x1x32xf32>
    %cst_10 = arith.constant 6.400000e+01 : f32
    %13 = vector.broadcast %cst_10 : f32 to vector<1x1x32xf32>
    %14 = arith.divf %12, %13 : vector<1x1x32xf32>
    %15 = arith.mulf %10, %10 : vector<1x64x32xf32>
    %cst_11 = arith.constant dense<0.000000e+00> : vector<1x32xf32>
    %16 = vector.multi_reduction <add>, %15, %cst_11 [1] : vector<1x64x32xf32> to vector<1x32xf32>
    %17 = vector.shape_cast %16 : vector<1x32xf32> to vector<1x1x32xf32>
    %cst_12 = arith.constant 6.400000e+01 : f32
    %18 = vector.broadcast %cst_12 : f32 to vector<1x1x32xf32>
    %19 = arith.divf %17, %18 : vector<1x1x32xf32>
    %20 = arith.mulf %14, %14 : vector<1x1x32xf32>
    %21 = arith.subf %19, %20 : vector<1x1x32xf32>
    %cst_13 = arith.constant 0.000000e+00 : f32
    %22 = vector.broadcast %cst_13 : f32 to vector<1x1x32xf32>
    %23 = arith.maximumf %21, %22 : vector<1x1x32xf32>
    %24 = vector.broadcast %14 : vector<1x1x32xf32> to vector<1x64x32xf32>
    %25 = arith.subf %10, %24 : vector<1x64x32xf32>
    %cst_14 = arith.constant 9.99999974E-6 : f32
    %26 = vector.broadcast %cst_14 : f32 to vector<1x1x32xf32>
    %27 = arith.addf %23, %26 : vector<1x1x32xf32>
    %28 = math.rsqrt %27 : vector<1x1x32xf32>
    %29 = vector.broadcast %28 : vector<1x1x32xf32> to vector<1x64x32xf32>
    %30 = arith.mulf %25, %29 : vector<1x64x32xf32>
    %c0_15 = arith.constant 0 : index
    %c0_16 = arith.constant 0 : index
    %c0_17 = arith.constant 0 : index
    %31 = vector.load %arg5[%c0_15, %c0_16, %c0_17] : memref<1x1x32xf32, #tpu.memory_space<vmem>>, vector<1x1x32xf32>
    %32 = vector.shape_cast %31 : vector<1x1x32xf32> to vector<1x32xf32>
    %33 = vector.shape_cast %32 : vector<1x32xf32> to vector<1x1x32xf32>
    %34 = vector.broadcast %33 : vector<1x1x32xf32> to vector<1x64x32xf32>
    %35 = arith.mulf %30, %34 : vector<1x64x32xf32>
    %c0_18 = arith.constant 0 : index
    %c0_19 = arith.constant 0 : index
    %c0_20 = arith.constant 0 : index
    %36 = vector.load %arg6[%c0_18, %c0_19, %c0_20] : memref<1x1x32xf32, #tpu.memory_space<vmem>>, vector<1x1x32xf32>
    %37 = vector.shape_cast %36 : vector<1x1x32xf32> to vector<1x32xf32>
    %38 = vector.shape_cast %37 : vector<1x32xf32> to vector<1x1x32xf32>
    %39 = vector.broadcast %38 : vector<1x1x32xf32> to vector<1x64x32xf32>
    %40 = arith.addf %35, %39 : vector<1x64x32xf32>
    %cst_21 = arith.constant 0.000000e+00 : f32
    %41 = vector.broadcast %cst_21 : f32 to vector<1x64x32xf32>
    %42 = arith.cmpf oge, %40, %41 : vector<1x64x32xf32>
    %cst_22 = arith.constant 2.000000e-01 : f32
    %43 = vector.broadcast %cst_22 : f32 to vector<1x64x32xf32>
    %44 = arith.mulf %43, %40 : vector<1x64x32xf32>
    %45 = arith.select %42, %40, %44 : vector<1x64x32xi1>, vector<1x64x32xf32>
    %46 = tpu.transpose %45, [0, 2, 1] : vector<1x64x32xf32> -> vector<1x32x64xf32>
    %47 = arith.truncf %46 : vector<1x32x64xf32> to vector<1x32x64xbf16>
    %c0_23 = arith.constant 0 : index
    %c0_24 = arith.constant 0 : index
    %c0_25 = arith.constant 0 : index
    %c0_26 = arith.constant 0 : index
    %48 = vector.load %arg9[%c0_23, %c0_24, %c0_25, %c0_26] : memref<1x1x32x64xbf16, #tpu.memory_space<vmem>>, vector<1x1x32x64xbf16>
    %49 = vector.shape_cast %48 : vector<1x1x32x64xbf16> to vector<1x32x64xbf16>
    %50 = vector.shape_cast %47 : vector<1x32x64xbf16> to vector<1x1x32x64xbf16>
    tpu.vector_store %arg9[%c0_23, %c0_24, %c0_25, %c0_26], %50 {strides = array<i32>} : memref<1x1x32x64xbf16, #tpu.memory_space<vmem>>, vector<1x1x32x64xbf16>,
    %c0_27 = arith.constant 0 : index
    %c0_28 = arith.constant 0 : index
    %c0_29 = arith.constant 0 : index
    %51 = vector.load %arg7[%c0_27, %c0_28, %c0_29] : memref<1x1x32xf32, #tpu.memory_space<vmem>>, vector<1x1x32xf32>
    %52 = vector.shape_cast %51 : vector<1x1x32xf32> to vector<1x32xf32>
    %53 = vector.shape_cast %52 : vector<1x32xf32> to vector<1x1x32xf32>
    %54 = vector.broadcast %53 : vector<1x1x32xf32> to vector<1x64x32xf32>
    %55 = arith.mulf %45, %54 : vector<1x64x32xf32>
    %cst_30 = arith.constant dense<0.000000e+00> : vector<1x64xf32>
    %56 = vector.multi_reduction <add>, %55, %cst_30 [2] : vector<1x64x32xf32> to vector<1x64xf32>
    %c0_31 = arith.constant 0 : index
    %c0_32 = arith.constant 0 : index
    %c0_33 = arith.constant 0 : index
    %57 = vector.load %arg8[%c0_31, %c0_32, %c0_33] : memref<1x1x1xf32, #tpu.memory_space<vmem>>, vector<1x1x1xf32>
    %58 = vector.shape_cast %57 : vector<1x1x1xf32> to vector<1x1xf32>
    %59 = vector.broadcast %58 : vector<1x1xf32> to vector<1x64xf32>
    %60 = arith.addf %56, %59 : vector<1x64xf32>
    %61 = vector.shape_cast %60 : vector<1x64xf32> to vector<1x1x64xf32>
    %c0_34 = arith.constant 0 : index
    %c0_35 = arith.constant 0 : index
    %c0_36 = arith.constant 0 : index
    %c0_37 = arith.constant 0 : index
    %62 = vector.load %arg10[%c0_34, %c0_35, %c0_36, %c0_37] : memref<1x1x1x64xf32, #tpu.memory_space<vmem>>, vector<1x1x1x64xf32>
    %63 = vector.shape_cast %62 : vector<1x1x1x64xf32> to vector<1x1x64xf32>
    %64 = vector.shape_cast %61 : vector<1x1x64xf32> to vector<1x1x1x64xf32>
    tpu.vector_store %arg10[%c0_34, %c0_35, %c0_36, %c0_37], %64 {strides = array<i32>} : memref<1x1x1x64xf32, #tpu.memory_space<vmem>>, vector<1x1x1x64xf32>,
    return
  }
  func.func @transform_0(%arg0: i32, %arg1: i32) -> (i32, i32, i32, i32) {
    %c0_i32 = arith.constant 0 : i32
    %c0_i32_0 = arith.constant 0 : i32
    %c0_i32_1 = arith.constant 0 : i32
    return %arg0, %arg1, %c0_i32, %c0_i32_0 : i32, i32, i32, i32
  }
  func.func @transform_1(%arg0: i32, %arg1: i32) -> (i32, i32, i32) {
    %c0_i32 = arith.constant 0 : i32
    %c0_i32_0 = arith.constant 0 : i32
    %c0_i32_1 = arith.constant 0 : i32
    return %arg0, %c0_i32, %c0_i32_0 : i32, i32, i32
  }
  func.func @transform_2(%arg0: i32, %arg1: i32) -> (i32, i32, i32) {
    %c0_i32 = arith.constant 0 : i32
    %c0_i32_0 = arith.constant 0 : i32
    %c0_i32_1 = arith.constant 0 : i32
    return %arg0, %c0_i32, %c0_i32_0 : i32, i32, i32
  }
  func.func @transform_3(%arg0: i32, %arg1: i32) -> (i32, i32, i32) {
    %c0_i32 = arith.constant 0 : i32
    %c0_i32_0 = arith.constant 0 : i32
    %c0_i32_1 = arith.constant 0 : i32
    return %arg0, %c0_i32, %c0_i32_0 : i32, i32, i32
  }
  func.func @transform_4(%arg0: i32, %arg1: i32) -> (i32, i32, i32) {
    %c0_i32 = arith.constant 0 : i32
    %c0_i32_0 = arith.constant 0 : i32
    %c0_i32_1 = arith.constant 0 : i32
    return %arg0, %c0_i32, %c0_i32_0 : i32, i32, i32
  }
  func.func @transform_5(%arg0: i32, %arg1: i32) -> (i32, i32, i32) {
    %c0_i32 = arith.constant 0 : i32
    %c0_i32_0 = arith.constant 0 : i32
    %c0_i32_1 = arith.constant 0 : i32
    return %arg0, %c0_i32, %c0_i32_0 : i32, i32, i32
  }
  func.func @transform_6(%arg0: i32, %arg1: i32) -> (i32, i32, i32) {
    %c0_i32 = arith.constant 0 : i32
    %c0_i32_0 = arith.constant 0 : i32
    %c0_i32_1 = arith.constant 0 : i32
    return %arg0, %c0_i32, %c0_i32_0 : i32, i32, i32
  }
  func.func @transform_7(%arg0: i32, %arg1: i32) -> (i32, i32, i32, i32) {
    %c0_i32 = arith.constant 0 : i32
    %c0_i32_0 = arith.constant 0 : i32
    %c0_i32_1 = arith.constant 0 : i32
    return %arg0, %arg1, %c0_i32, %c0_i32_0 : i32, i32, i32, i32
  }
  func.func @transform_8(%arg0: i32, %arg1: i32) -> (i32, i32, i32, i32) {
    %c0_i32 = arith.constant 0 : i32
    %c0_i32_0 = arith.constant 0 : i32
    %c0_i32_1 = arith.constant 0 : i32
    return %arg0, %arg1, %c0_i32, %c0_i32_0 : i32, i32, i32, i32
  }
}

</mosaic_0001>

<bundles_post_ra>
// kernel: multiscale_discriminator_forward.2
= control target key start
LH: loop header
LB: loop body
LE: loop exit
PB: predicated region body
PF: predicated region fallthrough
CT: control target
= control target key end

     0   :  { %s1503_s18 = smov 0   ;;  %s1505_s19 = smov 0   ;;  %s2182_s0 = inlined_call_operand.vmem [shape: bf16[1,2,256,48], index: 0, kind: input, shape index: {}]   ;;  %s2183_s1 = inlined_call_operand.vmem [shape: bf16[2,48,16], index: 1, kind: input, shape index: {}]   ;;  %s2184_s2 = inlined_call_operand.vmem [shape: f32[2,1,16], index: 2, kind: input, shape index: {}]   ;;  %s2185_s3 = inlined_call_operand.vmem [shape: f32[2,1,16], index: 3, kind: input, shape index: {}]   ;;  %s2186_s4 = inlined_call_operand.vmem [shape: f32[2,1,16], index: 4, kind: input, shape index: {}]   ;;  %s2187_s5 = inlined_call_operand.vmem [shape: bf16[2,2,16,256], index: 5, kind: output, shape index: {}]  }
   0x1   :  { %s1507_s20 = smov 0   ;;  %s1509_s21 = smov 0  }
   0x2   :  { %s1511_s22 = smov 0  }
   0x3 LB: > { %s24_s23 = sadd.s32 1, %s1462_s20  ;;  %s27_s24 = sadd.s32 1, %s1466_s21  ;;  %s1470_s22 = sphi %s1511_s22, %s15_s22   ;;  %s1466_s21 = sphi %s1509_s21, %s2191_s21   ;;  %s1462_s20 = sphi %s1507_s20, %s2190_s20   ;;  %s1458_s19 = sphi %s1505_s19, %s2189_s19   ;;  %s1454_s18 = sphi %s1503_s18, %s2188_s18  }
   0x4   : > { %p25_p0 = scmp.ge.s32.totalorder %s24_s23, 2  ;;  %p1211_p1 = scmp.ge.s32.totalorder %s1470_s22, 1 }
   0x5   : > { %p235_p2 = scmp.lt.s32.totalorder %s1470_s22, 5 }
   0x6   : > { %s2193_s23 = smov (%p25_p0, %s24_s23), 0  ;;  %s2195_s24 = smov (!%p25_p0, %s27_s24), %s1466_s21 }
   0x7   : > { %p236_p3 = pnand %p1211_p1, %p235_p2  ;;  %p29_p4 = scmp.ge.s32.totalorder %s2195_s24, 2 }
   0x8   : > { %p286_p5 = scmp.lt.s32.totalorder (!%p236_p3), %s1458_s19, 1  ;;  %p281_p6 = scmp.lt.s32.totalorder (!%p236_p3), %s1454_s18, 1 }
   0x9   : > { %s2197_s24 = smov (%p29_p4, %s2195_s24), 0  ;;  %239 = sbr.rel (%p236_p3) target bundleno = 495 (0x1ef), region = 40 }
   0xe   : > { %s2199_s19 = smov (!%p286_p5, %s1458_s19), 1  ;;  %s2201_s18 = smov (!%p281_p6, %s1454_s18), 1  ;;  %vm450_vm0 = vcmask 392192   ;;  %vm588_vm1 = vcmask 130048  }
   0xf   : > { %s1341_s25 = smul.u32 24, %s2199_s19  ;;  %s293_s28 = scalar_lea.vmem %s2184_s2, %s2199_s19 }
  0x10   : > { %s296_s6 = scalar_lea.vmem %s2185_s3, %s2199_s19  ;;  %s299_s9 = scalar_lea.vmem %s2186_s4, %s2199_s19  ;;  %v1608_v32 = vld [vmem:[%s293_s28] ss:$0 sm:$0xff] }
  0x11   : > { %s290_s12 = scalar_lea.vmem %s2183_s1, %s1341_s25  ;;  %s1312_s13 = sshll.u32 %s2201_s18, 7 }
  0x12   : > { %v1331_v0 = vld [vmem:[%s290_s12 + $0x10] sm:$0xff]  ;;  %v1330_v1 = vld [vmem:[%s290_s12 + $0x8] sm:$0xff]  ;;  %v1329_v2 = vld [vmem:[%s290_s12] sm:$0xff]  ;;  %s1557_s16 = scalar_lea.vmem %s2182_s0, %s1312_s13  ;;  %s1215_s30 = sshll.u32 %s2201_s18, 2 }
  0x13   : > { %504 = vmatpush.bf16.msra.mxu0 %v1331_v0  ;;  %1332 = vmatpush.bf16.msra.mxu1 %v1331_v0  ;;  %v1313_v3 = vld [vmem:[%s1557_s16] sm:$0xff]  ;;  %v1314_v7 = vld [vmem:[%s1557_s16 + $0x8] sm:$0xff]  ;;  %v1315_v11 = vld [vmem:[%s1557_s16 + $0x10] sm:$0xff] }
  0x14   : > { %1333 = vmatpush.bf16.msra.mxu2 %v1331_v0  ;;  %1334 = vmatpush.bf16.msra.mxu3 %v1331_v0  ;;  %v1317_v4 = vld [vmem:[%s1557_s16 + $0x20] sm:$0xff]  ;;  %v1318_v8 = vld [vmem:[%s1557_s16 + $0x28] sm:$0xff]  ;;  %v1319_v12 = vld [vmem:[%s1557_s16 + $0x30] sm:$0xff] }
  0x15   : > { %v1321_v5 = vld [vmem:[%s1557_s16 + $0x40] sm:$0xff]  ;;  %v1322_v9 = vld [vmem:[%s1557_s16 + $0x48] sm:$0xff]  ;;  %v1323_v13 = vld [vmem:[%s1557_s16 + $0x50] sm:$0xff] }
  0x16   : > { %v1325_v6 = vld [vmem:[%s1557_s16 + $0x60] sm:$0xff]  ;;  %v1326_v10 = vld [vmem:[%s1557_s16 + $0x68] sm:$0xff]  ;;  %v1327_v14 = vld [vmem:[%s1557_s16 + $0x70] sm:$0xff] }
  0x17   : > { %505 = vmatpush.bf16.msra.mxu0 %v1330_v1  ;;  %1335 = vmatpush.bf16.msra.mxu1 %v1330_v1  ;;  %v1316_v15 = vld [vmem:[%s1557_s16 + $0x18] sm:$0xff] }
  0x18   : > { %1336 = vmatpush.bf16.msra.mxu2 %v1330_v1  ;;  %1337 = vmatpush.bf16.msra.mxu3 %v1330_v1  ;;  %v1320_v16 = vld [vmem:[%s1557_s16 + $0x38] sm:$0xff] }
  0x19   : > { %v1324_v17 = vld [vmem:[%s1557_s16 + $0x58] sm:$0xff] }
  0x1a   : > { %v1328_v18 = vld [vmem:[%s1557_s16 + $0x78] sm:$0xff] }
  0x1b   : > { %506 = vmatpush.bf16.msra.mxu0 %v1329_v2  ;;  %1338 = vmatpush.bf16.msra.mxu1 %v1329_v2 }
  0x1c   : > { %1339 = vmatpush.bf16.msra.mxu2 %v1329_v2  ;;  %1340 = vmatpush.bf16.msra.mxu3 %v1329_v2 }
  0x1e   : > { %1294 = vmatmul.msk.bf16.vlgmr.msra.gmra.mxu0 %vm450_vm0, %v1313_v3  ;;  %1298 = vmatmul.msk.bf16.vlgmr.msra.gmra.mxu1 %vm450_vm0, %v1317_v4 }
  0x1f   : > { %1302 = vmatmul.msk.bf16.vlgmr.msra.gmra.mxu2 %vm450_vm0, %v1321_v5  ;;  %1306 = vmatmul.msk.bf16.vlgmr.msra.gmra.mxu3 %vm450_vm0, %v1325_v6 }
  0x2e   : > { %1295 = vmatmul.msk.bf16.gmra.mxu0 %vm450_vm0, %v1314_v7  ;;  %1299 = vmatmul.msk.bf16.gmra.mxu1 %vm450_vm0, %v1318_v8 }
  0x2f   : > { %1303 = vmatmul.msk.bf16.gmra.mxu2 %vm450_vm0, %v1322_v9  ;;  %1307 = vmatmul.msk.bf16.gmra.mxu3 %vm450_vm0, %v1326_v10 }
  0x3e   : > { %1296 = vmatmul.msk.bf16.gmra.mxu0 %vm450_vm0, %v1315_v11  ;;  %1300 = vmatmul.msk.bf16.gmra.mxu1 %vm450_vm0, %v1319_v12 }
  0x3f   : > { %1304 = vmatmul.msk.bf16.gmra.mxu2 %vm450_vm0, %v1323_v13  ;;  %1308 = vmatmul.msk.bf16.gmra.mxu3 %vm450_vm0, %v1327_v14 }
  0x4e   : > { %1297 = vmatmul.msk.bf16.gmra.mxu0 %vm450_vm0, %v1316_v15  ;;  %1301 = vmatmul.msk.bf16.gmra.mxu1 %vm450_vm0, %v1320_v16 }
  0x4f   : > { %1305 = vmatmul.msk.bf16.gmra.mxu2 %vm450_vm0, %v1324_v17  ;;  %1309 = vmatmul.msk.bf16.gmra.mxu3 %vm450_vm0, %v1328_v18 }
  0x9b   : > { %v508_v19 = vpop.f32.mrf.mxu0  ;;  %v528_v20 = vpop.f32.mrf.mxu1 }
  0x9c   : > { %v1618_v36 = vadd.f32 %v1608_v32, %v508_v19  ;;  %v1673_v9 = vadd.f32 %v1608_v32, %v528_v20 }
  0x9e   : > { %v666_v42 = vmul.f32 %v1618_v36, %v1618_v36  ;;  %v589_v46 = vsel %vm588_vm1, %v1618_v36, 0.0 }
  0xa0   : > { %v698_v52 = vsel %vm588_vm1, %v666_v42, 0.0  ;;  %v604_v42 = vsel %vm588_vm1, %v1673_v9, 0.0 }
  0xa2   : > { %v1591_v23 = vpop.f32.mrf.mxu2  ;;  %v1599_v29 = vpop.f32.mrf.mxu3 }
  0xa3   : > { %v510_v21 = vpop.f32.mrf.mxu0  ;;  %v530_v22 = vpop.f32.mrf.mxu1 }
  0xa4   : > { %v1615_v35 = vadd.f32 %v1608_v32, %v510_v21  ;;  %v1679_v16 = vadd.f32 %v1608_v32, %v530_v22 }
  0xa6   : > { %v667_v40 = vmul.f32 %v1615_v35, %v1615_v35  ;;  %v590_v43 = vsel %vm588_vm1, %v1615_v35, 0.0 }
  0xa7   : > { %v591_v53 = vadd.f32 %v590_v43, %v589_v46  ;;  %v675_v43 = vmul.f32 %v1679_v16, %v1679_v16 }
  0xa8   : > { %v699_v48 = vsel %vm588_vm1, %v667_v40, 0.0 }
  0xa9   : > { %v700_v60 = vadd.f32 %v699_v48, %v698_v52  ;;  %v606_v52 = vsel %vm588_vm1, %v1679_v16, 0.0 }
  0xaa   : > { %v1595_v26 = vpop.f32.mrf.mxu2  ;;  %v1612_v34 = vpop.f32.mrf.mxu3 }
  0xab   : > { %v513_v24 = vpop.f32.mrf.mxu0  ;;  %v1593_v25 = vpop.f32.mrf.mxu1 }
  0xac   : > { %v1621_v38 = vadd.f32 %v1608_v32, %v513_v24  ;;  %v674_v24 = vmul.f32 %v1673_v9, %v1673_v9 }
  0xae   : > { %v668_v44 = vmul.f32 %v1621_v38, %v1621_v38  ;;  %v592_v49 = vsel %vm588_vm1, %v1621_v38, 0.0 }
  0xaf   : > { %v593_v61 = vadd.f32 %v592_v49, %v591_v53 }
  0xb0   : > { %v701_v56 = vsel %vm588_vm1, %v668_v44, 0.0 }
  0xb1   : > { %v702_v1 = vadd.f32 %v701_v56, %v700_v60 }
  0xb2   : > { %v1601_v31 = vpop.f32.mrf.mxu2  ;;  %v1650_v55 = vpop.f32.mrf.mxu3 }
  0xb3   : > { %v515_v27 = vpop.f32.mrf.mxu0  ;;  %v1597_v28 = vpop.f32.mrf.mxu1 }
  0xb4   : > { %v1628_v41 = vadd.f32 %v1608_v32, %v515_v27  ;;  %v1691_v27 = vadd.f32 %v1608_v32, %v1593_v25  ;;  %v1703_v44 = vadd.f32 %v1608_v32, %v1597_v28 }
  0xb6   : > { %v669_v50 = vmul.f32 %v1628_v41, %v1628_v41  ;;  %v594_v57 = vsel %vm588_vm1, %v1628_v41, 0.0  ;;  %v676_v53 = vmul.f32 %v1691_v27, %v1691_v27  ;;  %v677_v60 = vmul.f32 %v1703_v44, %v1703_v44 }
  0xb7   : > { %v595_v2 = vadd.f32 %v594_v57, %v593_v61  ;;  %v715_v57 = vsel %vm588_vm1, %v675_v43, 0.0 }
  0xb8   : > { %v703_v62 = vsel %vm588_vm1, %v669_v50, 0.0  ;;  %v713_v50 = vsel %vm588_vm1, %v674_v24, 0.0 }
  0xb9   : > { %v704_v7 = vadd.f32 %v703_v62, %v702_v1  ;;  %v717_v1 = vsel %vm588_vm1, %v676_v53, 0.0 }
  0xba   : > { %v1623_v39 = vpop.f32.mrf.mxu2  ;;  %v1685_v21 = vpop.f32.mrf.mxu3 }
  0xbb   : > { %v518_v30 = vpop.f32.mrf.mxu0  ;;  %v1610_v33 = vpop.f32.mrf.mxu1 }
  0xbc   : > { %v1637_v45 = vadd.f32 %v1608_v32, %v518_v30 }
  0xbe   : > { %v670_v58 = vmul.f32 %v1637_v45, %v1637_v45  ;;  %v596_v63 = vsel %vm588_vm1, %v1637_v45, 0.0 }
  0xbf   : > { %v597_v8 = vadd.f32 %v596_v63, %v595_v2 }
  0xc0   : > { %v705_v4 = vsel %vm588_vm1, %v670_v58, 0.0  ;;  %v608_v58 = vsel %vm588_vm1, %v1691_v27, 0.0 }
  0xc1   : > { %v706_v12 = vadd.f32 %v705_v4, %v704_v7 }
  0xc2   : > { %v1665_v3 = vpop.f32.mrf.mxu2  ;;  %v1731_v7 = vpop.f32.mrf.mxu3 }
  0xc3   : > { %v520_v37 = vpop.f32.mrf.mxu0  ;;  %v540_v47 = vpop.f32.mrf.mxu1 }
  0xc4   : > { %v1647_v51 = vadd.f32 %v1608_v32, %v520_v37  ;;  %v1721_v61 = vadd.f32 %v1608_v32, %v540_v47  ;;  %v719_v47 = vsel %vm588_vm1, %v677_v60, 0.0 }
  0xc6   : > { %v671_v0 = vmul.f32 %v1647_v51, %v1647_v51  ;;  %v598_v5 = vsel %vm588_vm1, %v1647_v51, 0.0 }
  0xc7   : > { %v599_v13 = vadd.f32 %v598_v5, %v597_v8 }
  0xc8   : > { %v707_v10 = vsel %vm588_vm1, %v671_v0, 0.0 }
  0xc9   : > { %v708_v19 = vadd.f32 %v707_v10, %v706_v12  ;;  %v679_v10 = vmul.f32 %v1721_v61, %v1721_v61 }
  0xca   : > { %v560_v49 = vpop.f32.mrf.mxu2  ;;  %v580_v60 = vpop.f32.mrf.mxu3 }
  0xcb   : > { %v523_v54 = vpop.f32.mrf.mxu0  ;;  %v543_v15 = vpop.f32.mrf.mxu1 }
  0xcc   : > { %v1658_v59 = vadd.f32 %v1608_v32, %v523_v54  ;;  %v1713_v54 = vadd.f32 %v1608_v32, %v1610_v33  ;;  %v610_v33 = vsel %vm588_vm1, %v1703_v44, 0.0  ;;  %v1729_v4 = vadd.f32 %v1608_v32, %v543_v15 }
  0xce   : > { %v672_v6 = vmul.f32 %v1658_v59, %v1658_v59  ;;  %v600_v11 = vsel %vm588_vm1, %v1658_v59, 0.0  ;;  %v678_v2 = vmul.f32 %v1713_v54, %v1713_v54  ;;  %v612_v8 = vsel %vm588_vm1, %v1713_v54, 0.0 }
  0xcf   : > { %v601_v20 = vadd.f32 %v600_v11, %v599_v13 }
  0xd0   : > { %v709_v17 = vsel %vm588_vm1, %v672_v6, 0.0  ;;  %v721_v15 = vsel %vm588_vm1, %v678_v2, 0.0 }
  0xd1   : > { %v710_v37 = vadd.f32 %v709_v17, %v708_v19  ;;  %v614_v17 = vsel %vm588_vm1, %v1721_v61, 0.0  ;;  %v680_v19 = vmul.f32 %v1729_v4, %v1729_v4 }
  0xd3   : > { %v525_v14 = vpop.f32.mrf.mxu0  ;;  %v545_v0 = vpop.f32.mrf.mxu1 }
  0xd4   : > { %v1683_v18 = vadd.f32 %v1608_v32, %v525_v14  ;;  %v1739_v11 = vadd.f32 %v1608_v32, %v545_v0  ;;  %v1743_v14 = vadd.f32 %v1608_v32, %v1591_v23  ;;  %v616_v23 = vsel %vm588_vm1, %v1729_v4, 0.0 }
  0xd6   : > { %v602_v22 = vsel %vm588_vm1, %v1683_v18, 0.0  ;;  %v673_v30 = vmul.f32 %v1683_v18, %v1683_v18  ;;  %v620_v53 = vsel %vm588_vm1, %v1743_v14, 0.0 }
  0xd7   : > { %v603_v40 = vadd.f32 %v602_v22, %v601_v20  ;;  %v563_v22 = vpop.f32.mrf.mxu2 }
  0xd8   : > { %v711_v25 = vsel %vm588_vm1, %v673_v30, 0.0  ;;  %v1752_v30 = vadd.f32 %v1608_v32, %v1595_v26  ;;  %v725_v26 = vsel %vm588_vm1, %v680_v19, 0.0 }
  0xd9   : > { %v605_v46 = vadd.f32 %v604_v42, %v603_v40  ;;  %v712_v48 = vadd.f32 %v711_v25, %v710_v37  ;;  %v723_v37 = vsel %vm588_vm1, %v679_v10, 0.0  ;;  %v681_v40 = vmul.f32 %v1739_v11, %v1739_v11 }
  0xda   : > { %v682_v25 = vmul.f32 %v1743_v14, %v1743_v14 }
  0xdb   : > { %v607_v56 = vadd.f32 %v606_v52, %v605_v46  ;;  %v714_v28 = vadd.f32 %v713_v50, %v712_v48  ;;  %v1763_v46 = vadd.f32 %v1608_v32, %v1601_v31  ;;  %v618_v48 = vsel %vm588_vm1, %v1739_v11, 0.0 }
  0xdc   : > { %v727_v31 = vsel %vm588_vm1, %v681_v40, 0.0  ;;  %v1812_v40 = vadd.f32 %v1608_v32, %v1599_v29 }
  0xdd   : > { %v609_v62 = vadd.f32 %v608_v58, %v607_v56  ;;  %v716_v63 = vadd.f32 %v715_v57, %v714_v28  ;;  %v683_v56 = vmul.f32 %v1752_v30, %v1752_v30  ;;  %v1774_v28 = vadd.f32 %v1608_v32, %v1623_v39 }
  0xde   : > { %v684_v0 = vmul.f32 %v1763_v46, %v1763_v46 }
  0xdf   : > { %v718_v5 = vadd.f32 %v717_v1, %v716_v63  ;;  %v611_v6 = vadd.f32 %v610_v33, %v609_v62  ;;  %v729_v62 = vsel %vm588_vm1, %v682_v25, 0.0  ;;  %v622_v63 = vsel %vm588_vm1, %v1752_v30, 0.0 }
  0xe0   : > { %v1784_v1 = vadd.f32 %v1608_v32, %v1665_v3  ;;  %v731_v2 = vsel %vm588_vm1, %v683_v56, 0.0  ;;  %v626_v3 = vsel %vm588_vm1, %v1774_v28, 0.0 }
  0xe1   : > { %v613_v12 = vadd.f32 %v612_v8, %v611_v6  ;;  %v720_v13 = vadd.f32 %v719_v47, %v718_v5  ;;  %v624_v5 = vsel %vm588_vm1, %v1763_v46, 0.0  ;;  %v685_v6 = vmul.f32 %v1774_v28, %v1774_v28 }
  0xe2   : > { %v1792_v47 = vadd.f32 %v1608_v32, %v560_v49  ;;  %v628_v49 = vsel %vm588_vm1, %v1784_v1, 0.0 }
  0xe3   : > { %v615_v20 = vadd.f32 %v614_v17, %v613_v12  ;;  %v722_v24 = vadd.f32 %v721_v15, %v720_v13  ;;  %v565_v12 = vpop.f32.mrf.mxu2  ;;  %v733_v13 = vsel %vm588_vm1, %v684_v0, 0.0  ;;  %v686_v15 = vmul.f32 %v1784_v1, %v1784_v1 }
  0xe4   : > { %v1800_v17 = vadd.f32 %v1608_v32, %v563_v22  ;;  %v630_v25 = vsel %vm588_vm1, %v1792_v47, 0.0 }
  0xe5   : > { %v617_v42 = vadd.f32 %v616_v23, %v615_v20  ;;  %v724_v43 = vadd.f32 %v723_v37, %v722_v24  ;;  %v735_v24 = vsel %vm588_vm1, %v685_v6, 0.0  ;;  %v687_v37 = vmul.f32 %v1792_v47, %v1792_v47 }
  0xe6   : > { %v1808_v23 = vadd.f32 %v1608_v32, %v565_v12  ;;  %v632_v56 = vsel %vm588_vm1, %v1800_v17, 0.0  ;;  %v1843_v6 = vadd.f32 %v1608_v32, %v1685_v21  ;;  %v1472_v12 = vmov 256.0  }
  0xe7   : > { %v726_v50 = vadd.f32 %v725_v26, %v724_v43  ;;  %v619_v52 = vadd.f32 %v618_v48, %v617_v42  ;;  %v737_v43 = vsel %vm588_vm1, %v686_v15, 0.0  ;;  %v688_v26 = vmul.f32 %v1800_v17, %v1800_v17 }
  0xe8   : > { %v739_v29 = vsel %vm588_vm1, %v687_v37, 0.0  ;;  %v634_v0 = vsel %vm588_vm1, %v1808_v23, 0.0  ;;  %1428 = vrcp.f32 %v1472_v12  ;;  %v693_v37 = vmul.f32 %v1843_v6, %v1843_v6 }
  0xe9   : > { %v621_v57 = vadd.f32 %v620_v53, %v619_v52  ;;  %v728_v58 = vadd.f32 %v727_v31, %v726_v50  ;;  %v583_v52 = vpop.f32.mrf.mxu3  ;;  %v1821_v53 = vadd.f32 %v1608_v32, %v1612_v34  ;;  %v689_v31 = vmul.f32 %v1808_v23, %v1808_v23 }
  0xea   : > { %v741_v34 = vsel %vm588_vm1, %v688_v26, 0.0 }
  0xeb   : > { %v623_v33 = vadd.f32 %v622_v63, %v621_v57  ;;  %v730_v39 = vadd.f32 %v729_v62, %v728_v58  ;;  %v690_v57 = vmul.f32 %v1812_v40, %v1812_v40  ;;  %v1832_v63 = vadd.f32 %v1608_v32, %v1650_v55 }
  0xec   : > { %v743_v55 = vsel %vm588_vm1, %v689_v31, 0.0 }
  0xed   : > { %v732_v8 = vadd.f32 %v731_v2, %v730_v39  ;;  %v625_v10 = vadd.f32 %v624_v5, %v623_v33  ;;  %v636_v2 = vsel %vm588_vm1, %v1812_v40, 0.0  ;;  %v691_v5 = vmul.f32 %v1821_v53, %v1821_v53 }
  0xee   : > { %v692_v15 = vmul.f32 %v1832_v63, %v1832_v63 }
  0xef   : > { %v627_v19 = vadd.f32 %v626_v3, %v625_v10  ;;  %v734_v20 = vadd.f32 %v733_v13, %v732_v8  ;;  %v745_v13 = vsel %vm588_vm1, %v690_v57, 0.0  ;;  %v638_v3 = vsel %vm588_vm1, %v1821_v53, 0.0 }
  0xf0   : > { %v749_v26 = vsel %vm588_vm1, %v692_v15, 0.0 }
  0xf1   : > { %v629_v42 = vadd.f32 %v628_v49, %v627_v19  ;;  %v736_v22 = vadd.f32 %v735_v24, %v734_v20  ;;  %v1853_v19 = vadd.f32 %v1608_v32, %v1731_v7  ;;  %v747_v24 = vsel %vm588_vm1, %v691_v5, 0.0 }
  0xf2   : > { %v640_v49 = vsel %vm588_vm1, %v1832_v63, 0.0  ;;  %v642_v7 = vsel %vm588_vm1, %v1843_v6, 0.0 }
  0xf3   : > { %v631_v48 = vadd.f32 %v630_v25, %v629_v42  ;;  %v738_v50 = vadd.f32 %v737_v43, %v736_v22  ;;  %v1861_v42 = vadd.f32 %v1608_v32, %v580_v60  ;;  %v585_v25 = vpop.f32.mrf.mxu3  ;;  %v751_v60 = vsel %vm588_vm1, %v693_v37, 0.0 }
  0xf4   : > { %v644_v57 = vsel %vm588_vm1, %v1853_v19, 0.0 }
  0xf5   : > { %v740_v58 = vadd.f32 %v739_v29, %v738_v50  ;;  %v633_v62 = vadd.f32 %v632_v56, %v631_v48  ;;  %v694_v48 = vmul.f32 %v1853_v19, %v1853_v19  ;;  %v1869_v50 = vadd.f32 %v1608_v32, %v583_v52  ;;  %v1429_v29 = vpop.eup %1428 }
  0xf6   : > { %v646_v52 = vsel %vm588_vm1, %v1861_v42, 0.0  ;;  %vm663_vm2 = vweird.f32 %v1429_v29 }
  0xf7   : > { %v742_v33 = vadd.f32 %v741_v34, %v740_v58  ;;  %v635_v39 = vadd.f32 %v634_v0, %v633_v62  ;;  %v695_v58 = vmul.f32 %v1861_v42, %v1861_v42  ;;  %v1877_v62 = vadd.f32 %v1608_v32, %v585_v25 }
  0xf9   : > { %v637_v8 = vadd.f32 %v636_v2, %v635_v39  ;;  %v744_v10 = vadd.f32 %v743_v55, %v742_v33  ;;  %v753_v33 = vsel %vm588_vm1, %v694_v48, 0.0  ;;  %v696_v39 = vmul.f32 %v1869_v50, %v1869_v50 }
  0xfa   : > { %v659_v2 = vmul.f32 256.0, %v1429_v29  ;;  %v697_v32 = vmul.f32 %v1877_v62, %v1877_v62  ;;  %v650_v15 = vsel %vm588_vm1, %v1877_v62, 0.0 }
  0xfb   : > { %v639_v21 = vadd.f32 %v638_v3, %v637_v8  ;;  %v746_v20 = vadd.f32 %v745_v13, %v744_v10  ;;  %v755_v8 = vsel %vm588_vm1, %v695_v58, 0.0  ;;  %v648_v10 = vsel %vm588_vm1, %v1869_v50, 0.0 }
  0xfc   : > { %v757_v3 = vsel %vm588_vm1, %v696_v39, 0.0 }
  0xfd   : > { %v748_v22 = vadd.f32 %v747_v24, %v746_v20  ;;  %v641_v43 = vadd.f32 %v640_v49, %v639_v21  ;;  %v660_v21 = vsub.f32 1.0, %v659_v2  ;;  %v759_v49 = vsel %vm588_vm1, %v697_v32, 0.0 }
  0xff   : > { %v643_v56 = vadd.f32 %v642_v7, %v641_v43  ;;  %v750_v31 = vadd.f32 %v749_v26, %v748_v22  ;;  %v661_v43 = vmul.f32 %v1429_v29, %v660_v21 }
 0x101   : > { %v645_v34 = vadd.f32 %v644_v57, %v643_v56  ;;  %v752_v0 = vadd.f32 %v751_v60, %v750_v31  ;;  %v662_v56 = vadd.f32 %v1429_v29, %v661_v43 }
 0x103   : > { %v647_v5 = vadd.f32 %v646_v52, %v645_v34  ;;  %v754_v55 = vadd.f32 %v753_v33, %v752_v0  ;;  %v664_v34 = vsel %vm663_vm2, %v1429_v29, %v662_v56 }
 0x105   : > { %v756_v12 = vadd.f32 %v755_v8, %v754_v55  ;;  %v649_v13 = vadd.f32 %v648_v10, %v647_v5 }
 0x107   : > { %v758_v20 = vadd.f32 %v757_v3, %v756_v12  ;;  %v651_v24 = vadd.f32 %v650_v15, %v649_v13 }
 0x109   : > { %v652_v37 = vrot.slane %v651_v24, 4  ;;  %v760_v22 = vadd.f32 %v759_v49, %v758_v20 }
 0x10b   : > { %v653_v25 = vadd.f32 %v652_v37, %v651_v24  ;;  %v761_v26 = vrot.slane %v760_v22, 4 }
 0x10d   : > { %v654_v7 = vrot.slane %v653_v25, 2  ;;  %v762_v48 = vadd.f32 %v761_v26, %v760_v22 }
 0x10f   : > { %v655_v31 = vadd.f32 %v654_v7, %v653_v25  ;;  %v763_v60 = vrot.slane %v762_v48, 2 }
 0x111   : > { %v656_v57 = vrot.slane %v655_v31, 1  ;;  %v764_v58 = vadd.f32 %v763_v60, %v762_v48 }
 0x113   : > { %v657_v0 = vadd.f32 %v656_v57, %v655_v31  ;;  %v765_v33 = vrot.slane %v764_v58, 1 }
 0x115   : > { %v1893_v52 = vmul.f32 %v664_v34, %v657_v0  ;;  %v766_v39 = vadd.f32 %v765_v33, %v764_v58 }
 0x117   : > { %v767_v2 = vmul.f32 %v766_v39, %v664_v34  ;;  %v768_v5 = vmul.f32 %v1893_v52, %v1893_v52  ;;  %v802_v55 = vsub.f32 %v1877_v62, %v1893_v52  ;;  %v771_v29 = vsub.f32 %v1618_v36, %v1893_v52 }
 0x118   : > { %v772_v3 = vsub.f32 %v1615_v35, %v1893_v52  ;;  %v773_v21 = vsub.f32 %v1621_v38, %v1893_v52  ;;  %v774_v20 = vsub.f32 %v1628_v41, %v1893_v52  ;;  %v775_v62 = vsub.f32 %v1637_v45, %v1893_v52 }
 0x119   : > { %v769_v8 = vsub.f32 %v767_v2, %v768_v5  ;;  %v776_v24 = vsub.f32 %v1647_v51, %v1893_v52  ;;  %v777_v49 = vsub.f32 %v1658_v59, %v1893_v52  ;;  %v778_v36 = vsub.f32 %v1683_v18, %v1893_v52 }
 0x11a   : > { %v779_v35 = vsub.f32 %v1673_v9, %v1893_v52  ;;  %v780_v38 = vsub.f32 %v1679_v16, %v1893_v52  ;;  %v781_v41 = vsub.f32 %v1691_v27, %v1893_v52  ;;  %v782_v45 = vsub.f32 %v1703_v44, %v1893_v52 }
 0x11b   : > { %v770_v10 = vmax.f32 %v769_v8, 0.0  ;;  %v783_v51 = vsub.f32 %v1713_v54, %v1893_v52  ;;  %v784_v59 = vsub.f32 %v1721_v61, %v1893_v52  ;;  %v785_v9 = vsub.f32 %v1729_v4, %v1893_v52 }
 0x11c   : > { %v786_v18 = vsub.f32 %v1739_v11, %v1893_v52  ;;  %v787_v27 = vsub.f32 %v1743_v14, %v1893_v52  ;;  %v788_v44 = vsub.f32 %v1752_v30, %v1893_v52  ;;  %v789_v54 = vsub.f32 %v1763_v46, %v1893_v52  ;;  %v1952_v46 = vld [vmem:[%s296_s6] ss:$0 sm:$0xff]  ;;  %s1216_s6 = sshll.u32 %s2199_s19, 3 }
 0x11d   : > { %v803_v32 = vadd.f32 1e-05, %v770_v10  ;;  %v790_v61 = vsub.f32 %v1774_v28, %v1893_v52  ;;  %v791_v4 = vsub.f32 %v1784_v1, %v1893_v52  ;;  %v792_v11 = vsub.f32 %v1792_v47, %v1893_v52  ;;  %s306_s7 = sadd.s32 %s1216_s6, %s1215_s30 }
 0x11e   : > { %v793_v14 = vsub.f32 %v1800_v17, %v1893_v52  ;;  %v794_v30 = vsub.f32 %v1808_v23, %v1893_v52  ;;  %v795_v28 = vsub.f32 %v1812_v40, %v1893_v52  ;;  %v796_v1 = vsub.f32 %v1821_v53, %v1893_v52  ;;  %v1973_v40 = vld [vmem:[%s299_s9] ss:$0 sm:$0xff]  ;;  %s1217_s8 = sshll.u32 %s306_s7, 2 }
 0x11f   : > { %1430 = vrsqrt.f32 %v803_v32  ;;  %vm810_vm4 = vweird.f32 %v803_v32  ;;  %v797_v47 = vsub.f32 %v1832_v63, %v1893_v52  ;;  %v798_v17 = vsub.f32 %v1843_v6, %v1893_v52  ;;  %s308_s11 = scalar_lea.vmem %s2187_s5, %s1217_s8 }
 0x120   : > { %v799_v43 = vsub.f32 %v1853_v19, %v1893_v52  ;;  %v800_v25 = vsub.f32 %v1861_v42, %v1893_v52  ;;  %v801_v26 = vsub.f32 %v1869_v50, %v1893_v52 }
 0x125   : > { %v1431_v12 = vpop.eup %1430 }
 0x126   : > { %v805_v13 = vmul.f32 %v1431_v12, %v803_v32  ;;  %vm811_vm3 = vweird.f32 %v1431_v12 }
 0x127   : > { %vm812_vm5 = vmor %vm810_vm4, %vm811_vm3 }
 0x128   : > { %v806_v15 = vmul.f32 %v1431_v12, %v805_v13 }
 0x12a   : > { %v807_v37 = vmul.f32 0.5, %v806_v15 }
 0x12c   : > { %v808_v16 = vsub.f32 1.5, %v807_v37 }
 0x12e   : > { %v809_v22 = vmul.f32 %v1431_v12, %v808_v16 }
 0x130   : > { %v813_v23 = vsel %vm812_vm5, %v1431_v12, %v809_v22 }
 0x131   : > { %v1975_v53 = vmul.f32 %v813_v23, %v802_v55  ;;  %v814_v63 = vmul.f32 %v813_v23, %v771_v29  ;;  %v830_v6 = vmul.f32 %v813_v23, %v787_v27  ;;  %v815_v7 = vmul.f32 %v813_v23, %v772_v3 }
 0x132   : > { %v816_v48 = vmul.f32 %v813_v23, %v773_v21  ;;  %v817_v56 = vmul.f32 %v813_v23, %v774_v20  ;;  %v818_v19 = vmul.f32 %v813_v23, %v775_v62  ;;  %v1977_v31 = vmul.f32 %v813_v23, %v776_v24 }
 0x133   : > { %v850_v42 = vmul.f32 %v1952_v46, %v814_v63  ;;  %v866_v50 = vmul.f32 %v1952_v46, %v830_v6  ;;  %v1981_v60 = vmul.f32 %v813_v23, %v777_v49  ;;  %v1983_v57 = vmul.f32 %v813_v23, %v778_v36 }
 0x134   : > { %v1985_v58 = vmul.f32 %v813_v23, %v779_v35  ;;  %v1987_v34 = vmul.f32 %v813_v23, %v780_v38  ;;  %v1989_v0 = vmul.f32 %v813_v23, %v781_v41  ;;  %v1991_v33 = vmul.f32 %v813_v23, %v782_v45 }
 0x135   : > { %v886_v52 = vadd.f32 %v1973_v40, %v850_v42  ;;  %v902_v39 = vadd.f32 %v1973_v40, %v866_v50  ;;  %v1995_v2 = vmul.f32 %v813_v23, %v783_v51  ;;  %v1997_v5 = vmul.f32 %v813_v23, %v784_v59 }
 0x136   : > { %v1999_v55 = vmul.f32 %v813_v23, %v785_v9  ;;  %v2001_v8 = vmul.f32 %v813_v23, %v786_v18  ;;  %v831_v10 = vmul.f32 %v813_v23, %v788_v44  ;;  %v832_v32 = vmul.f32 %v813_v23, %v789_v54 }
 0x137   : > { %vm918_vm6 = vcmp.ge.f32.partialorder %v886_v52, 0.0  ;;  %vm934_vm7 = vcmp.ge.f32.partialorder %v902_v39, 0.0  ;;  %v950_v12 = vmul.f32 0.2, %v886_v52  ;;  %v966_v13 = vmul.f32 0.2, %v902_v39 }
 0x138   : > { %v833_v29 = vmul.f32 %v813_v23, %v790_v61  ;;  %v834_v3 = vmul.f32 %v813_v23, %v791_v4  ;;  %v835_v15 = vmul.f32 %v813_v23, %v792_v11  ;;  %v836_v21 = vmul.f32 %v813_v23, %v793_v14 }
 0x139   : > { %v982_v20 = vsel %vm918_vm6, %v886_v52, %v950_v12  ;;  %v998_v62 = vsel %vm934_vm7, %v902_v39, %v966_v13  ;;  %v837_v24 = vmul.f32 %v813_v23, %v794_v30  ;;  %v2003_v49 = vmul.f32 %v813_v23, %v795_v28 }
 0x13a   : > { %v1383_v36 = vpack.i.bf16 %v998_v62, %v982_v20  ;;  %v2005_v35 = vmul.f32 %v813_v23, %v796_v1  ;;  %v2007_v37 = vmul.f32 %v813_v23, %v797_v47  ;;  %v2009_v38 = vmul.f32 %v813_v23, %v798_v17 }
 0x13b   : > { %v2011_v41 = vmul.f32 %v813_v23, %v799_v43  ;;  %v2013_v45 = vmul.f32 %v813_v23, %v800_v25  ;;  %v2015_v51 = vmul.f32 %v813_v23, %v801_v26  ;;  %v851_v59 = vmul.f32 %v1952_v46, %v815_v7 }
 0x13c   : > { %1384 = vxpose.xlu0.b32.start [1/16] (narrow) %v1383_v36, 16  ;;  %v867_v9 = vmul.f32 %v1952_v46, %v831_v10  ;;  %v852_v18 = vmul.f32 %v1952_v46, %v816_v48  ;;  %v868_v16 = vmul.f32 %v1952_v46, %v832_v32  ;;  %v853_v27 = vmul.f32 %v1952_v46, %v817_v56 }
 0x13d   : > { %v887_v44 = vadd.f32 %v1973_v40, %v851_v59  ;;  %v869_v54 = vmul.f32 %v1952_v46, %v833_v29  ;;  %v854_v61 = vmul.f32 %v1952_v46, %v818_v19  ;;  %v870_v4 = vmul.f32 %v1952_v46, %v834_v3 }
 0x13e   : > { %v903_v11 = vadd.f32 %v1973_v40, %v867_v9  ;;  %v888_v22 = vadd.f32 %v1973_v40, %v852_v18  ;;  %v904_v14 = vadd.f32 %v1973_v40, %v868_v16  ;;  %v889_v30 = vadd.f32 %v1973_v40, %v853_v27 }
 0x13f   : > { %vm919_vm8 = vcmp.ge.f32.partialorder %v887_v44, 0.0  ;;  %v951_v28 = vmul.f32 0.2, %v887_v44  ;;  %v905_v1 = vadd.f32 %v1973_v40, %v869_v54  ;;  %v890_v47 = vadd.f32 %v1973_v40, %v854_v61 }
 0x140   : > { %vm935_vm9 = vcmp.ge.f32.partialorder %v903_v11, 0.0  ;;  %v967_v17 = vmul.f32 0.2, %v903_v11  ;;  %vm920_vm10 = vcmp.ge.f32.partialorder %v888_v22, 0.0  ;;  %vm936_vm11 = vcmp.ge.f32.partialorder %v904_v14, 0.0 }
 0x141   : > { %v983_v23 = vsel %vm919_vm8, %v887_v44, %v951_v28  ;;  %v952_v43 = vmul.f32 0.2, %v888_v22  ;;  %v968_v25 = vmul.f32 0.2, %v904_v14  ;;  %vm921_vm12 = vcmp.ge.f32.partialorder %v889_v30, 0.0 }
 0x142   : > { %v999_v26 = vsel %vm935_vm9, %v903_v11, %v967_v17  ;;  %vm937_vm13 = vcmp.ge.f32.partialorder %v905_v1, 0.0  ;;  %v953_v63 = vmul.f32 0.2, %v889_v30  ;;  %v969_v6 = vmul.f32 0.2, %v905_v1 }
 0x143   : > { %v1385_v7 = vpack.i.bf16 %v999_v26, %v983_v23  ;;  %v984_v48 = vsel %vm920_vm10, %v888_v22, %v952_v43  ;;  %v1000_v56 = vsel %vm936_vm11, %v904_v14, %v968_v25  ;;  %v906_v19 = vadd.f32 %v1973_v40, %v870_v4 }
 0x144   : > { %v1387_v42 = vpack.i.bf16 %v1000_v56, %v984_v48  ;;  %v2033_v50 = vsel %vm921_vm12, %v889_v30, %v953_v63  ;;  %v2035_v52 = vsel %vm937_vm13, %v905_v1, %v969_v6  ;;  %vm922_vm14 = vcmp.ge.f32.partialorder %v890_v47, 0.0 }
 0x145   : > { %1386 = vxpose.xlu0.b32.cont [2/16] (narrow) %v1385_v7, 16  ;;  %v1389_v39 = vpack.i.bf16 %v2035_v52, %v2033_v50  ;;  %vm938_vm15 = vcmp.ge.f32.partialorder %v906_v19, 0.0  ;;  %v954_v10 = vmul.f32 0.2, %v890_v47  ;;  %v970_v32 = vmul.f32 0.2, %v906_v19 }
 0x146   : > { %v855_v12 = vmul.f32 %v1952_v46, %v1977_v31  ;;  %v871_v13 = vmul.f32 %v1952_v46, %v835_v15  ;;  %v856_v29 = vmul.f32 %v1952_v46, %v1981_v60  ;;  %v872_v3 = vmul.f32 %v1952_v46, %v836_v21 }
 0x147   : > { %v2045_v20 = vsel %vm922_vm14, %v890_v47, %v954_v10  ;;  %v2047_v62 = vsel %vm938_vm15, %v906_v19, %v970_v32  ;;  %v857_v36 = vmul.f32 %v1952_v46, %v1983_v57  ;;  %v873_v59 = vmul.f32 %v1952_v46, %v837_v24 }
 0x148   : > { %v1391_v9 = vpack.i.bf16 %v2047_v62, %v2045_v20  ;;  %v891_v31 = vadd.f32 %v1973_v40, %v855_v12  ;;  %v907_v15 = vadd.f32 %v1973_v40, %v871_v13  ;;  %v892_v60 = vadd.f32 %v1973_v40, %v856_v29 }
 0x149   : > { %v908_v21 = vadd.f32 %v1973_v40, %v872_v3  ;;  %v893_v18 = vadd.f32 %v1973_v40, %v857_v36  ;;  %v909_v16 = vadd.f32 %v1973_v40, %v873_v59  ;;  %v858_v57 = vmul.f32 %v1952_v46, %v1985_v58 }
 0x14a   : > { %vm923_vm0 = vcmp.ge.f32.partialorder %v891_v31, 0.0  ;;  %vm939_vm1 = vcmp.ge.f32.partialorder %v907_v15, 0.0  ;;  %v955_v24 = vmul.f32 0.2, %v891_v31  ;;  %v971_v27 = vmul.f32 0.2, %v907_v15 }
 0x14b   : > { %vm924_vm2 = vcmp.ge.f32.partialorder %v892_v60, 0.0  ;;  %vm940_vm3 = vcmp.ge.f32.partialorder %v908_v21, 0.0  ;;  %v956_v44 = vmul.f32 0.2, %v892_v60  ;;  %v972_v54 = vmul.f32 0.2, %v908_v21 }
 0x14c   : > { %v2062_v61 = vsel %vm923_vm0, %v891_v31, %v955_v24  ;;  %v2064_v4 = vsel %vm939_vm1, %v907_v15, %v971_v27  ;;  %vm925_vm4 = vcmp.ge.f32.partialorder %v893_v18, 0.0  ;;  %vm941_vm5 = vcmp.ge.f32.partialorder %v909_v16, 0.0 }
 0x14d   : > { %1388 = vxpose.xlu0.b32.cont [3/16] (narrow) %v1387_v42, 16  ;;  %v1393_v11 = vpack.i.bf16 %v2064_v4, %v2062_v61  ;;  %v2068_v22 = vsel %vm924_vm2, %v892_v60, %v956_v44  ;;  %v2070_v58 = vsel %vm940_vm3, %v908_v21, %v972_v54  ;;  %v957_v14 = vmul.f32 0.2, %v893_v18 }
 0x14e   : > { %v1395_v30 = vpack.i.bf16 %v2070_v58, %v2068_v22  ;;  %v973_v28 = vmul.f32 0.2, %v909_v16  ;;  %v874_v1 = vmul.f32 %v1952_v46, %v2003_v49  ;;  %v894_v47 = vadd.f32 %v1973_v40, %v858_v57 }
 0x14f   : > { %v2077_v17 = vsel %vm925_vm4, %v893_v18, %v957_v14  ;;  %v859_v23 = vmul.f32 %v1952_v46, %v1987_v34  ;;  %v875_v43 = vmul.f32 %v1952_v46, %v2005_v35  ;;  %v860_v25 = vmul.f32 %v1952_v46, %v1989_v0 }
 0x150   : > { %v2085_v26 = vsel %vm941_vm5, %v909_v16, %v973_v28  ;;  %v910_v63 = vadd.f32 %v1973_v40, %v874_v1  ;;  %vm926_vm6 = vcmp.ge.f32.partialorder %v894_v47, 0.0  ;;  %v958_v6 = vmul.f32 0.2, %v894_v47 }
 0x151   : > { %v1397_v49 = vpack.i.bf16 %v2085_v26, %v2077_v17  ;;  %v895_v7 = vadd.f32 %v1973_v40, %v859_v23  ;;  %v911_v48 = vadd.f32 %v1973_v40, %v875_v43  ;;  %v876_v34 = vmul.f32 %v1952_v46, %v2007_v37 }
 0x152   : > { %vm942_vm7 = vcmp.ge.f32.partialorder %v910_v63, 0.0  ;;  %v974_v35 = vmul.f32 0.2, %v910_v63  ;;  %v2094_v56 = vsel %vm926_vm6, %v894_v47, %v958_v6  ;;  %v896_v0 = vadd.f32 %v1973_v40, %v860_v25 }
 0x153   : > { %vm927_vm8 = vcmp.ge.f32.partialorder %v895_v7, 0.0  ;;  %vm943_vm9 = vcmp.ge.f32.partialorder %v911_v48, 0.0  ;;  %v959_v19 = vmul.f32 0.2, %v895_v7  ;;  %v975_v42 = vmul.f32 0.2, %v911_v48 }
 0x154   : > { %v2097_v10 = vsel %vm942_vm7, %v910_v63, %v974_v35  ;;  %v912_v32 = vadd.f32 %v1973_v40, %v876_v34  ;;  %vm928_vm10 = vcmp.ge.f32.partialorder %v896_v0, 0.0  ;;  %v960_v12 = vmul.f32 0.2, %v896_v0 }
 0x155   : > { %1390 = vxpose.xlu0.b32.cont [4/16] (narrow) %v1389_v39, 16  ;;  %v1399_v37 = vpack.i.bf16 %v2097_v10, %v2094_v56  ;;  %v2105_v13 = vsel %vm927_vm8, %v895_v7, %v959_v19  ;;  %v2107_v29 = vsel %vm943_vm9, %v911_v48, %v975_v42  ;;  %v861_v3 = vmul.f32 %v1952_v46, %v1991_v33 }
 0x156   : > { %v1401_v36 = vpack.i.bf16 %v2107_v29, %v2105_v13  ;;  %vm944_vm11 = vcmp.ge.f32.partialorder %v912_v32, 0.0  ;;  %v976_v59 = vmul.f32 0.2, %v912_v32  ;;  %v2113_v31 = vsel %vm928_vm10, %v896_v0, %v960_v12 }
 0x157   : > { %v877_v50 = vmul.f32 %v1952_v46, %v2009_v38  ;;  %v897_v52 = vadd.f32 %v1973_v40, %v861_v3  ;;  %v862_v39 = vmul.f32 %v1952_v46, %v1995_v2  ;;  %v878_v15 = vmul.f32 %v1952_v46, %v2011_v41 }
 0x158   : > { %v1008_v60 = vsel %vm944_vm11, %v912_v32, %v976_v59  ;;  %v863_v33 = vmul.f32 %v1952_v46, %v1997_v5  ;;  %v879_v21 = vmul.f32 %v1952_v46, %v2013_v45  ;;  %v864_v18 = vmul.f32 %v1952_v46, %v1999_v55 }
 0x159   : > { %v1403_v38 = vpack.i.bf16 %v1008_v60, %v2113_v31  ;;  %v913_v16 = vadd.f32 %v1973_v40, %v877_v50  ;;  %vm929_vm12 = vcmp.ge.f32.partialorder %v897_v52, 0.0  ;;  %v961_v57 = vmul.f32 0.2, %v897_v52 }
 0x15a   : > { %v898_v2 = vadd.f32 %v1973_v40, %v862_v39  ;;  %v914_v41 = vadd.f32 %v1973_v40, %v878_v15  ;;  %v899_v24 = vadd.f32 %v1973_v40, %v863_v33  ;;  %v915_v5 = vadd.f32 %v1973_v40, %v879_v21 }
 0x15b   : > { %vm945_vm13 = vcmp.ge.f32.partialorder %v913_v16, 0.0  ;;  %v977_v27 = vmul.f32 0.2, %v913_v16  ;;  %v993_v45 = vsel %vm929_vm12, %v897_v52, %v961_v57  ;;  %v880_v55 = vmul.f32 %v1952_v46, %v2015_v51 }
 0x15c   : > { %vm930_vm14 = vcmp.ge.f32.partialorder %v898_v2, 0.0  ;;  %vm946_vm15 = vcmp.ge.f32.partialorder %v914_v41, 0.0  ;;  %v962_v44 = vmul.f32 0.2, %v898_v2  ;;  %v978_v54 = vmul.f32 0.2, %v914_v41 }
 0x15d   : > { %1392 = vxpose.xlu0.b32.cont [5/16] (narrow) %v1391_v9, 16  ;;  %v1009_v14 = vsel %vm945_vm13, %v913_v16, %v977_v27  ;;  %vm931_vm0 = vcmp.ge.f32.partialorder %v899_v24, 0.0  ;;  %vm947_vm1 = vcmp.ge.f32.partialorder %v915_v5, 0.0  ;;  %v963_v28 = vmul.f32 0.2, %v899_v24 }
 0x15e   : > { %v1405_v1 = vpack.i.bf16 %v1009_v14, %v993_v45  ;;  %v994_v47 = vsel %vm930_vm14, %v898_v2, %v962_v44  ;;  %v1010_v23 = vsel %vm946_vm15, %v914_v41, %v978_v54  ;;  %v979_v43 = vmul.f32 0.2, %v915_v5 }
 0x15f   : > { %v1407_v25 = vpack.i.bf16 %v1010_v23, %v994_v47  ;;  %v995_v63 = vsel %vm931_vm0, %v899_v24, %v963_v28  ;;  %v900_v51 = vadd.f32 %v1973_v40, %v864_v18  ;;  %v916_v6 = vadd.f32 %v1973_v40, %v880_v55 }
 0x160   : > { %v1011_v7 = vsel %vm947_vm1, %v915_v5, %v979_v43  ;;  %v865_v48 = vmul.f32 %v1952_v46, %v2001_v8  ;;  %v881_v20 = vmul.f32 %v1952_v46, %v1975_v53 }
 0x161   : > { %v1409_v62 = vpack.i.bf16 %v1011_v7, %v995_v63  ;;  %vm932_vm2 = vcmp.ge.f32.partialorder %v900_v51, 0.0  ;;  %vm948_vm3 = vcmp.ge.f32.partialorder %v916_v6, 0.0  ;;  %v964_v9 = vmul.f32 0.2, %v900_v51 }
 0x162   : > { %v980_v34 = vmul.f32 0.2, %v916_v6  ;;  %v901_v35 = vadd.f32 %v1973_v40, %v865_v48  ;;  %v917_v0 = vadd.f32 %v1973_v40, %v881_v20 }
 0x163   : > { %v996_v19 = vsel %vm932_vm2, %v900_v51, %v964_v9 }
 0x164   : > { %v1012_v42 = vsel %vm948_vm3, %v916_v6, %v980_v34  ;;  %vm933_vm4 = vcmp.ge.f32.partialorder %v901_v35, 0.0  ;;  %vm949_vm5 = vcmp.ge.f32.partialorder %v917_v0, 0.0  ;;  %v965_v32 = vmul.f32 0.2, %v901_v35 }
 0x165   : > { %1394 = vxpose.xlu0.b32.cont [6/16] (narrow) %v1393_v11, 16  ;;  %v1411_v46 = vpack.i.bf16 %v1012_v42, %v996_v19  ;;  %v981_v53 = vmul.f32 0.2, %v917_v0 }
 0x166   : > { %v997_v8 = vsel %vm933_vm4, %v901_v35, %v965_v32 }
 0x167   : > { %v1013_v12 = vsel %vm949_vm5, %v917_v0, %v981_v53 }
 0x168   : > { %v1413_v3 = vpack.i.bf16 %v1013_v12, %v997_v8 }
 0x16d   : > { %1396 = vxpose.xlu0.b32.cont [7/16] (narrow) %v1395_v30, 16 }
 0x175   : > { %1398 = vxpose.xlu0.b32.cont [8/16] (narrow) %v1397_v49, 16 }
 0x17d   : > { %1400 = vxpose.xlu0.b32.cont [9/16] (narrow) %v1399_v37, 16 }
 0x185   : > { %1402 = vxpose.xlu0.b32.cont [10/16] (narrow) %v1401_v36, 16 }
 0x18d   : > { %1404 = vxpose.xlu0.b32.cont [11/16] (narrow) %v1403_v38, 16 }
 0x195   : > { %1406 = vxpose.xlu0.b32.cont [12/16] (narrow) %v1405_v1, 16 }
 0x19d   : > { %1408 = vxpose.xlu0.b32.cont [13/16] (narrow) %v1407_v25, 16 }
 0x1a5   : > { %1410 = vxpose.xlu0.b32.cont [14/16] (narrow) %v1409_v62, 16 }
 0x1ad   : > { %1412 = vxpose.xlu0.b32.cont [15/16] (narrow) %v1411_v46, 16 }
 0x1b5   : > { %1414 = vxpose.xlu0.b32.end [16/16] (narrow) %v1413_v3, 16 }
 0x1e1   : > { %v1415_v40 = vpop.trf.xlu0 }
 0x1e2   : > { %v1419_v61 = vunpack.i.h.bf16 %v1415_v40  ;;  %v1416_v4 = vunpack.i.l.bf16 %v1415_v40 }
 0x1e4   : > { %v1078_v11 = vpack.c.bf16 %v1419_v61, %v1416_v4 }
 0x1e6   : > { %1080 = vst [vmem:[%s308_s11] sm:$0xff] %v1078_v11 }
 0x1e9   : > { %v1420_v22 = vpop.trf.xlu0 }
 0x1ea   : > { %v1424_v58 = vunpack.i.h.bf16 %v1420_v22  ;;  %v1421_v30 = vunpack.i.l.bf16 %v1420_v22 }
 0x1ec   : > { %v1079_v17 = vpack.c.bf16 %v1424_v58, %v1421_v30 }
 0x1ee   : > { %1081 = vst [vmem:[%s308_s11 + $0x8] sm:$0xff] %v1079_v17 }
 0x1ef PF: > { %s15_s22 = sadd.s32 1, %s1470_s22   ;;  %s2188_s18 = smov %s1462_s20 }
 0x1f0   : > { %p12_p7 = scmp.ge.s32.totalorder %s15_s22, 6   ;;  %s2189_s19 = smov %s1466_s21 }
 0x1f1   : > { %s2190_s20 = smov %s2193_s23  ;;  %s2191_s21 = smov %s2197_s24 }
 0x1f2   :  { %14 = sbr.rel (!%p12_p7) target bundleno = 3 (0x3), region = 82 }

// kernel: multiscale_discriminator_forward.3
= control target key start
LH: loop header
LB: loop body
LE: loop exit
PB: predicated region body
PF: predicated region fallthrough
CT: control target
= control target key end

     0   :  { %s1447_s27 = smov 0   ;;  %s1449_s28 = smov 0   ;;  %s1683_s0 = inlined_call_operand.vmem [shape: bf16[2,2,64,256], index: 0, kind: input, shape index: {}]   ;;  %s1684_s1 = inlined_call_operand.vmem [shape: bf16[2,256,32], index: 1, kind: input, shape index: {}]   ;;  %s1685_s2 = inlined_call_operand.vmem [shape: f32[2,1,32], index: 2, kind: input, shape index: {}]   ;;  %s1686_s3 = inlined_call_operand.vmem [shape: f32[2,1,32], index: 3, kind: input, shape index: {}]   ;;  %s1687_s4 = inlined_call_operand.vmem [shape: f32[2,1,32], index: 4, kind: input, shape index: {}]   ;;  %s1688_s5 = inlined_call_operand.vmem [shape: f32[2,1,32], index: 5, kind: input, shape index: {}]   ;;  %s1689_s6 = inlined_call_operand.vmem [shape: f32[2,1,1], index: 6, kind: input, shape index: {}]   ;;  %s1690_s7 = inlined_call_operand.vmem [shape: bf16[2,2,32,64], index: 7, kind: output, shape index: {0}]   ;;  %s1691_s8 = inlined_call_operand.vmem [shape: f32[2,2,1,64], index: 8, kind: output, shape index: {1}]  }
   0x1   :  { %s1451_s29 = smov 0   ;;  %s1453_s30 = smov 0  }
   0x2   :  { %s1455_s9 = smov 0  }
   0x3 LB: > { %s28_s10 = sadd.s32 1, %s1390_s29  ;;  %s31_s11 = sadd.s32 1, %s1394_s30  ;;  %s1398_s9 = sphi %s1455_s9, %s19_s9   ;;  %s1394_s30 = sphi %s1453_s30, %s1695_s30   ;;  %s1390_s29 = sphi %s1451_s29, %s1694_s29   ;;  %s1386_s28 = sphi %s1449_s28, %s1693_s28   ;;  %s1382_s27 = sphi %s1447_s27, %s1692_s27  }
   0x4   : > { %p29_p0 = scmp.ge.s32.totalorder %s28_s10, 2  ;;  %p1158_p1 = scmp.ge.s32.totalorder %s1398_s9, 1 }
   0x5   : > { %p337_p2 = scmp.lt.s32.totalorder %s1398_s9, 5 }
   0x6   : > { %s1697_s10 = smov (%p29_p0, %s28_s10), 0  ;;  %s1699_s11 = smov (!%p29_p0, %s31_s11), %s1394_s30 }
   0x7   : > { %p338_p3 = pnand %p1158_p1, %p337_p2  ;;  %p33_p4 = scmp.ge.s32.totalorder %s1699_s11, 2 }
   0x8   : > { %p406_p5 = scmp.lt.s32.totalorder (!%p338_p3), %s1386_s28, 1  ;;  %p408_p6 = scmp.lt.s32.totalorder (!%p338_p3), %s1382_s27, 1 }
   0x9   : > { %s1701_s11 = smov (%p33_p4, %s1699_s11), 0  ;;  %341 = sbr.rel (%p338_p3) target bundleno = 455 (0x1c7), region = 48 }
   0xe   : > { %s1703_s28 = smov (!%p406_p5, %s1386_s28), 1  ;;  %s1705_s27 = smov (!%p408_p6, %s1382_s27), 1  ;;  %v1400_v56 = vmov 0   ;;  %vm689_vm0 = vcmask 261120   ;;  %vm932_vm13 = vcmask 130112   ;;  %vm936_vm14 = vcmask 195712  }
   0xf   : > { %s1266_s12 = sshll.u32 %s1703_s28, 7  ;;  %s422_s18 = scalar_lea.vmem %s1685_s2, %s1703_s28  ;;  %1350 = vset.pattern.permute.xlu1 %v1400_v56  ;;  %vm940_vm15 = vcmask 261312  }
  0x10   : > { %s1485_s15 = scalar_lea.vmem %s1684_s1, %s1266_s12  ;;  %s1159_s19 = sshll.u32 %s1705_s27, 4  ;;  %v1352_v46 = vld [vmem:[%s422_s18] ss:$0 sm:$0xff] }
  0x11   : > { %v1282_v0 = vld [vmem:[%s1485_s15 + $0x38] sm:$0xff]  ;;  %v1281_v2 = vld [vmem:[%s1485_s15 + $0x30] sm:$0xff]  ;;  %v1280_v4 = vld [vmem:[%s1485_s15 + $0x28] sm:$0xff]  ;;  %s1160_s20 = sshll.u32 %s1703_s28, 5  ;;  %s425_s13 = scalar_lea.vmem %s1686_s3, %s1703_s28 }
  0x12   : > { %v1290_v1 = vld [vmem:[%s1485_s15 + $0x78] sm:$0xff]  ;;  %631 = vmatpush.bf16.msra.mxu0 %v1282_v0  ;;  %1291 = vmatpush.bf16.msra.mxu2 %v1282_v0  ;;  %v1289_v3 = vld [vmem:[%s1485_s15 + $0x70] sm:$0xff]  ;;  %v1288_v5 = vld [vmem:[%s1485_s15 + $0x68] sm:$0xff]  ;;  %s412_s21 = sadd.s32 %s1160_s20, %s1159_s19  ;;  %s428_s16 = scalar_lea.vmem %s1687_s4, %s1703_s28 }
  0x13   : > { %660 = vmatpush.bf16.msra.mxu1 %v1290_v1  ;;  %1299 = vmatpush.bf16.msra.mxu3 %v1290_v1  ;;  %v1279_v6 = vld [vmem:[%s1485_s15 + $0x20] sm:$0xff]  ;;  %v1278_v8 = vld [vmem:[%s1485_s15 + $0x18] sm:$0xff]  ;;  %v1277_v10 = vld [vmem:[%s1485_s15 + $0x10] sm:$0xff]  ;;  %s1161_s22 = sshll.u32 %s412_s21, 2  ;;  %s431_s20 = scalar_lea.vmem %s1688_s5, %s1703_s28 }
  0x14   : > { %v1287_v7 = vld [vmem:[%s1485_s15 + $0x60] sm:$0xff]  ;;  %v1286_v9 = vld [vmem:[%s1485_s15 + $0x58] sm:$0xff]  ;;  %v1285_v11 = vld [vmem:[%s1485_s15 + $0x50] sm:$0xff]  ;;  %s1513_s25 = scalar_lea.vmem %s1683_s0, %s1161_s22  ;;  %s1164_s17 = sshll.u32 %s1705_s27, 2 }
  0x15   : > { %v1276_v12 = vld [vmem:[%s1485_s15 + $0x8] sm:$0xff]  ;;  %v1275_v14 = vld [vmem:[%s1485_s15] sm:$0xff]  ;;  %v1178_v28 = vld [vmem:[%s1513_s25 + $0x10] sm:$0xf]  ;;  %s1165_s19 = sshll.u32 %s1703_s28, 3 }
  0x16   : > { %632 = vmatpush.bf16.msra.mxu0 %v1281_v2  ;;  %1292 = vmatpush.bf16.msra.mxu2 %v1281_v2  ;;  %v1284_v13 = vld [vmem:[%s1485_s15 + $0x48] sm:$0xff]  ;;  %v1283_v15 = vld [vmem:[%s1485_s15 + $0x40] sm:$0xff]  ;;  %v1270_v29 = vld [vmem:[%s1513_s25 + $0x14] sm:$0xf0]  ;;  %s441_s21 = sadd.s32 %s1165_s19, %s1164_s17 }
  0x17   : > { %661 = vmatpush.bf16.msra.mxu1 %v1289_v3  ;;  %1300 = vmatpush.bf16.msra.mxu3 %v1289_v3  ;;  %v1170_v16 = vld [vmem:[%s1513_s25] sm:$0xf]  ;;  %v1268_v17 = vld [vmem:[%s1513_s25 + $0x4] sm:$0xf0]  ;;  %v1267_v20 = vld [vmem:[%s1513_s25 + $0x4] sm:$0xf]  ;;  %v1179_v36 = vor.u32 %v1270_v29, %v1178_v28 }
  0x18   : > { %v1186_v18 = vld [vmem:[%s1513_s25 + $0x20] sm:$0xf]  ;;  %v1272_v19 = vld [vmem:[%s1513_s25 + $0x24] sm:$0xf0]  ;;  %v1172_v21 = vld [vmem:[%s1513_s25 + $0x8] sm:$0xf0]  ;;  %v1171_v24 = vor.u32 %v1268_v17, %v1170_v16 }
  0x19   : > { %v1271_v22 = vld [vmem:[%s1513_s25 + $0x24] sm:$0xf]  ;;  %v1188_v23 = vld [vmem:[%s1513_s25 + $0x28] sm:$0xf0]  ;;  %v1187_v25 = vor.u32 %v1272_v19, %v1186_v18  ;;  %v1175_v26 = vor.u32 %v1267_v20, %v1172_v21  ;;  %v1194_v30 = vld [vmem:[%s1513_s25 + $0x30] sm:$0xf] }
  0x1a   : > { %633 = vmatpush.bf16.msra.mxu0 %v1280_v4  ;;  %1293 = vmatpush.bf16.msra.mxu2 %v1280_v4  ;;  %v1191_v27 = vor.u32 %v1271_v22, %v1188_v23  ;;  %v1274_v31 = vld [vmem:[%s1513_s25 + $0x34] sm:$0xf0]  ;;  %v1269_v32 = vld [vmem:[%s1513_s25 + $0x14] sm:$0xf]  ;;  %v1180_v33 = vld [vmem:[%s1513_s25 + $0x18] sm:$0xf0] }
  0x1b   : > { %662 = vmatpush.bf16.msra.mxu1 %v1288_v5  ;;  %1301 = vmatpush.bf16.msra.mxu3 %v1288_v5  ;;  %v1273_v34 = vld [vmem:[%s1513_s25 + $0x34] sm:$0xf]  ;;  %v1196_v35 = vld [vmem:[%s1513_s25 + $0x38] sm:$0xf0]  ;;  %v1195_v37 = vor.u32 %v1274_v31, %v1194_v30  ;;  %v1183_v38 = vor.u32 %v1269_v32, %v1180_v33  ;;  %s434_s25 = scalar_lea.vmem %s1689_s6, %s1703_s28  ;;  %v1401_v3 = vmov 64.0   ;;  %s1166_s24 = sshll.u32 %s441_s21, 2 }
  0x1c   : > { %v1199_v39 = vor.u32 %v1273_v34, %v1196_v35  ;;  %v904_v57 = vld [vmem:[%s434_s25] sm:$0x1]  ;;  %1356 = vrcp.f32 %v1401_v3  ;;  %s443_s18 = scalar_lea.vmem %s1690_s7, %s1166_s24 }
  0x1d   : > { %907 = vperm.xlu1 %1350, %v904_v57  }
  0x1e   : > { %634 = vmatpush.bf16.msra.mxu0 %v1279_v6  ;;  %1294 = vmatpush.bf16.msra.mxu2 %v1279_v6 }
  0x1f   : > { %663 = vmatpush.bf16.msra.mxu1 %v1287_v7  ;;  %1302 = vmatpush.bf16.msra.mxu3 %v1287_v7 }
  0x22   : > { %635 = vmatpush.bf16.msra.mxu0 %v1278_v8  ;;  %1295 = vmatpush.bf16.msra.mxu2 %v1278_v8  ;;  %v1357_v19 = vpop.eup %1356 }
  0x23   : > { %664 = vmatpush.bf16.msra.mxu1 %v1286_v9  ;;  %1303 = vmatpush.bf16.msra.mxu3 %v1286_v9  ;;  %v712_v34 = vmul.f32 64.0, %v1357_v19  ;;  %vm716_vm1 = vweird.f32 %v1357_v19 }
  0x26   : > { %636 = vmatpush.bf16.msra.mxu0 %v1277_v10  ;;  %1296 = vmatpush.bf16.msra.mxu2 %v1277_v10 }
  0x27   : > { %665 = vmatpush.bf16.msra.mxu1 %v1285_v11  ;;  %1304 = vmatpush.bf16.msra.mxu3 %v1285_v11 }
  0x2a   : > { %637 = vmatpush.bf16.msra.mxu0 %v1276_v12  ;;  %1297 = vmatpush.bf16.msra.mxu2 %v1276_v12 }
  0x2b   : > { %666 = vmatpush.bf16.msra.mxu1 %v1284_v13  ;;  %1305 = vmatpush.bf16.msra.mxu3 %v1284_v13 }
  0x2e   : > { %638 = vmatpush.bf16.msra.mxu0 %v1275_v14  ;;  %1298 = vmatpush.bf16.msra.mxu2 %v1275_v14 }
  0x2f   : > { %667 = vmatpush.bf16.msra.mxu1 %v1283_v15  ;;  %1306 = vmatpush.bf16.msra.mxu3 %v1283_v15 }
  0x31   : > { %639 = vmatmul.bf16.vlgmr.msra.gmra.mxu0 %v1171_v24  ;;  %649 = vmatmul.bf16.vlgmr.msra.gmra.mxu2 %v1187_v25 }
  0x32   : > { %668 = vmatmul.bf16.vlgmr.msra.gmra.mxu1 %v1175_v26  ;;  %678 = vmatmul.bf16.vlgmr.msra.gmra.mxu3 %v1191_v27 }
  0x41   : > { %644 = vmatmul.bf16.gmra.mxu0 %v1179_v36  ;;  %654 = vmatmul.bf16.gmra.mxu2 %v1195_v37 }
  0x42   : > { %673 = vmatmul.bf16.gmra.mxu1 %v1183_v38  ;;  %683 = vmatmul.bf16.gmra.mxu3 %v1199_v39 }
  0xae   : > { %v640_v40 = vpop.f32.mrf.mxu0 }
  0xaf   : > { %v669_v41 = vpop.f32.mrf.mxu1  ;;  %v641_v48 = vadd.f32 %v1352_v46, %v640_v40 }
  0xb1   : > { %v1557_v55 = vadd.f32 %v669_v41, %v641_v48  ;;  %v713_v48 = vsub.f32 1.0, %v712_v34 }
  0xb3   : > { %v719_v61 = vmul.f32 %v1557_v55, %v1557_v55  ;;  %v690_v4 = vsel %vm689_vm0, %v1557_v55, 0.0  ;;  %v714_v57 = vmul.f32 %v1357_v19, %v713_v48 }
  0xb4   : > { %v650_v42 = vpop.f32.mrf.mxu2 }
  0xb5   : > { %v679_v43 = vpop.f32.mrf.mxu3  ;;  %v651_v59 = vadd.f32 %v1352_v46, %v650_v42  ;;  %v727_v13 = vsel %vm689_vm0, %v719_v61, 0.0 }
  0xb6   : > { %v642_v44 = vpop.f32.mrf.mxu0 }
  0xb7   : > { %v671_v45 = vpop.f32.mrf.mxu1  ;;  %v643_v47 = vadd.f32 %v1352_v46, %v642_v44  ;;  %v1572_v5 = vadd.f32 %v679_v43, %v651_v59 }
  0xb9   : > { %v1555_v52 = vadd.f32 %v671_v45, %v643_v47  ;;  %v723_v20 = vmul.f32 %v1572_v5, %v1572_v5  ;;  %v697_v27 = vsel %vm689_vm0, %v1572_v5, 0.0 }
  0xbb   : > { %v720_v60 = vmul.f32 %v1555_v52, %v1555_v52  ;;  %v691_v63 = vsel %vm689_vm0, %v1555_v52, 0.0  ;;  %v734_v35 = vsel %vm689_vm0, %v723_v20, 0.0 }
  0xbc   : > { %v652_v49 = vpop.f32.mrf.mxu2  ;;  %v692_v11 = vadd.f32 %v691_v63, %v690_v4  ;;  %v715_v63 = vadd.f32 %v1357_v19, %v714_v57 }
  0xbd   : > { %v681_v50 = vpop.f32.mrf.mxu3  ;;  %v653_v0 = vadd.f32 %v1352_v46, %v652_v49  ;;  %v728_v7 = vsel %vm689_vm0, %v720_v60, 0.0 }
  0xbe   : > { %v645_v51 = vpop.f32.mrf.mxu0  ;;  %v729_v17 = vadd.f32 %v728_v7, %v727_v13  ;;  %v717_v4 = vsel %vm716_vm1, %v1357_v19, %v715_v63  ;;  %vm948_vm1 = vcmask 392512  }
  0xbf   : > { %v646_v53 = vadd.f32 %v1352_v46, %v645_v51  ;;  %v674_v54 = vpop.f32.mrf.mxu1  ;;  %v1578_v14 = vadd.f32 %v681_v50, %v653_v0 }
  0xc1   : > { %v1560_v58 = vadd.f32 %v674_v54, %v646_v53  ;;  %v724_v28 = vmul.f32 %v1578_v14, %v1578_v14  ;;  %v699_v36 = vsel %vm689_vm0, %v1578_v14, 0.0 }
  0xc3   : > { %v721_v1 = vmul.f32 %v1560_v58, %v1560_v58  ;;  %v693_v8 = vsel %vm689_vm0, %v1560_v58, 0.0  ;;  %v736_v41 = vsel %vm689_vm0, %v724_v28, 0.0 }
  0xc4   : > { %v655_v62 = vpop.f32.mrf.mxu2  ;;  %v694_v18 = vadd.f32 %v693_v8, %v692_v11 }
  0xc5   : > { %v684_v2 = vpop.f32.mrf.mxu3  ;;  %v656_v9 = vadd.f32 %v1352_v46, %v655_v62  ;;  %v730_v15 = vsel %vm689_vm0, %v721_v1, 0.0 }
  0xc6   : > { %v647_v6 = vpop.f32.mrf.mxu0  ;;  %v731_v24 = vadd.f32 %v730_v15, %v729_v17 }
  0xc7   : > { %v648_v10 = vadd.f32 %v1352_v46, %v647_v6  ;;  %v676_v12 = vpop.f32.mrf.mxu1  ;;  %v1585_v21 = vadd.f32 %v684_v2, %v656_v9 }
  0xc9   : > { %v1581_v16 = vadd.f32 %v676_v12, %v648_v10  ;;  %v725_v37 = vmul.f32 %v1585_v21, %v1585_v21  ;;  %v701_v42 = vsel %vm689_vm0, %v1585_v21, 0.0 }
  0xcb   : > { %v695_v22 = vsel %vm689_vm0, %v1581_v16, 0.0  ;;  %v722_v23 = vmul.f32 %v1581_v16, %v1581_v16 }
  0xcc   : > { %v696_v25 = vadd.f32 %v695_v22, %v694_v18  ;;  %v657_v26 = vpop.f32.mrf.mxu2 }
  0xcd   : > { %v732_v29 = vsel %vm689_vm0, %v722_v23, 0.0  ;;  %v658_v30 = vadd.f32 %v1352_v46, %v657_v26  ;;  %v686_v33 = vpop.f32.mrf.mxu3  ;;  %v738_v46 = vsel %vm689_vm0, %v725_v37, 0.0 }
  0xce   : > { %v698_v31 = vadd.f32 %v697_v27, %v696_v25  ;;  %v733_v32 = vadd.f32 %v732_v29, %v731_v24 }
  0xcf   : > { %v687_v38 = vadd.f32 %v686_v33, %v658_v30  ;;  %v1626_v33 = vld [vmem:[%s428_s16] ss:$0 sm:$0xff]  ;;  %s1167_s16 = sshll.u32 %s1703_s28, 1 }
  0xd0   : > { %v735_v39 = vadd.f32 %v734_v35, %v733_v32  ;;  %v700_v40 = vadd.f32 %v699_v36, %v698_v31 }
  0xd1   : > { %v726_v43 = vmul.f32 %v687_v38, %v687_v38  ;;  %v703_v47 = vsel %vm689_vm0, %v687_v38, 0.0 }
  0xd2   : > { %v702_v44 = vadd.f32 %v701_v42, %v700_v40  ;;  %v737_v45 = vadd.f32 %v736_v41, %v735_v39 }
  0xd3   : > { %v740_v51 = vsel %vm689_vm0, %v726_v43, 0.0  ;;  %v1355_v43 = vld [vmem:[%s431_s20] ss:$0 sm:$0xff]  ;;  %s449_s20 = sadd.s32 %s1167_s16, %s1705_s27 }
  0xd4   : > { %v704_v49 = vadd.f32 %v703_v47, %v702_v44  ;;  %v739_v50 = vadd.f32 %v738_v46, %v737_v45  ;;  %s450_s28 = scalar_lea.vmem %s1691_s8, %s449_s20 }
  0xd6   : > { %v705_v53 = vrot.slane %v704_v49, 4  ;;  %v741_v54 = vadd.f32 %v740_v51, %v739_v50 }
  0xd8   : > { %v706_v59 = vadd.f32 %v705_v53, %v704_v49  ;;  %v742_v60 = vrot.slane %v741_v54, 4 }
  0xda   : > { %v707_v61 = vrot.slane %v706_v59, 2  ;;  %v743_v62 = vadd.f32 %v742_v60, %v741_v54 }
  0xdc   : > { %v708_v0 = vadd.f32 %v707_v61, %v706_v59  ;;  %v744_v1 = vrot.slane %v743_v62, 2 }
  0xde   : > { %v709_v2 = vrot.slane %v708_v0, 1  ;;  %v745_v3 = vadd.f32 %v744_v1, %v743_v62 }
  0xe0   : > { %v710_v6 = vadd.f32 %v709_v2, %v708_v0  ;;  %v746_v7 = vrot.slane %v745_v3, 1 }
  0xe2   : > { %v718_v8 = vmul.f32 %v717_v4, %v710_v6  ;;  %v747_v9 = vadd.f32 %v746_v7, %v745_v3 }
  0xe4   : > { %v748_v10 = vmul.f32 %v747_v9, %v717_v4  ;;  %v749_v11 = vmul.f32 %v718_v8, %v718_v8  ;;  %v759_v12 = vsub.f32 %v687_v38, %v718_v8  ;;  %v755_v13 = vsub.f32 %v1581_v16, %v718_v8 }
  0xe5   : > { %v756_v17 = vsub.f32 %v1572_v5, %v718_v8  ;;  %v757_v18 = vsub.f32 %v1578_v14, %v718_v8  ;;  %v1615_v5 = vld [vmem:[%s425_s13] ss:$0 sm:$0xff]  ;;  %v752_v14 = vsub.f32 %v1557_v55, %v718_v8  ;;  %v753_v16 = vsub.f32 %v1555_v52, %v718_v8 }
  0xe6   : > { %v750_v15 = vsub.f32 %v748_v10, %v749_v11  ;;  %v754_v28 = vsub.f32 %v1560_v58, %v718_v8  ;;  %v758_v30 = vsub.f32 %v1585_v21, %v718_v8 }
  0xe8   : > { %v751_v20 = vmax.f32 %v750_v15, 0.0 }
  0xea   : > { %v760_v22 = vadd.f32 1e-05, %v751_v20 }
  0xec   : > { %1358 = vrsqrt.f32 %v760_v22  ;;  %vm767_vm3 = vweird.f32 %v760_v22 }
  0xf2   : > { %v1359_v23 = vpop.eup %1358 }
  0xf3   : > { %v762_v19 = vmul.f32 %v1359_v23, %v760_v22  ;;  %vm768_vm2 = vweird.f32 %v1359_v23 }
  0xf4   : > { %vm769_vm4 = vmor %vm767_vm3, %vm768_vm2  ;;  %vm952_vm2 = vcmask 458112   ;;  %vm956_vm3 = vcmask 523712  }
  0xf5   : > { %v763_v24 = vmul.f32 %v1359_v23, %v762_v19 }
  0xf7   : > { %v764_v25 = vmul.f32 0.5, %v763_v24 }
  0xf9   : > { %v765_v26 = vsub.f32 1.5, %v764_v25 }
  0xfb   : > { %v766_v27 = vmul.f32 %v1359_v23, %v765_v26 }
  0xfd   : > { %v770_v29 = vsel %vm769_vm4, %v1359_v23, %v766_v27  ;;  %vm959_vm4 = vcmask 516096  }
  0xfe   : > { %v778_v31 = vmul.f32 %v770_v29, %v759_v12  ;;  %v771_v32 = vmul.f32 %v770_v29, %v752_v14  ;;  %v772_v34 = vmul.f32 %v770_v29, %v753_v16  ;;  %v773_v35 = vmul.f32 %v770_v29, %v754_v28  ;;  %v908_v28 = vpop.permute.xlu1 %907 }
  0xff   : > { %v777_v36 = vmul.f32 %v770_v29, %v758_v30  ;;  %v774_v55 = vmul.f32 %v770_v29, %v755_v13  ;;  %v775_v37 = vmul.f32 %v770_v29, %v756_v17  ;;  %v776_v52 = vmul.f32 %v770_v29, %v757_v18 }
 0x100   : > { %v783_v58 = vmul.f32 %v1615_v5, %v771_v32  ;;  %v784_v38 = vmul.f32 %v1615_v5, %v772_v34  ;;  %v785_v21 = vmul.f32 %v1615_v5, %v773_v35  ;;  %v790_v17 = vmul.f32 %v1615_v5, %v778_v31 }
 0x101   : > { %v789_v39 = vmul.f32 %v1615_v5, %v777_v36  ;;  %v786_v47 = vmul.f32 %v1615_v5, %v774_v55  ;;  %v787_v2 = vmul.f32 %v1615_v5, %v775_v37  ;;  %v788_v10 = vmul.f32 %v1615_v5, %v776_v52 }
 0x102   : > { %v795_v40 = vadd.f32 %v1626_v33, %v783_v58  ;;  %v796_v41 = vadd.f32 %v1626_v33, %v784_v38  ;;  %v797_v42 = vadd.f32 %v1626_v33, %v785_v21  ;;  %v802_v23 = vadd.f32 %v1626_v33, %v790_v17 }
 0x103   : > { %v801_v44 = vadd.f32 %v1626_v33, %v789_v39  ;;  %v798_v62 = vadd.f32 %v1626_v33, %v786_v47  ;;  %v799_v7 = vadd.f32 %v1626_v33, %v787_v2  ;;  %v800_v13 = vadd.f32 %v1626_v33, %v788_v10 }
 0x104   : > { %vm803_vm5 = vcmp.ge.f32.partialorder %v795_v40, 0.0  ;;  %v811_v45 = vmul.f32 0.2, %v795_v40  ;;  %vm804_vm6 = vcmp.ge.f32.partialorder %v796_v41, 0.0  ;;  %v812_v46 = vmul.f32 0.2, %v796_v41 }
 0x105   : > { %v813_v50 = vmul.f32 0.2, %v797_v42  ;;  %v817_v51 = vmul.f32 0.2, %v801_v44  ;;  %vm805_vm7 = vcmp.ge.f32.partialorder %v797_v42, 0.0  ;;  %vm809_vm8 = vcmp.ge.f32.partialorder %v801_v44, 0.0 }
 0x106   : > { %v819_v48 = vsel %vm803_vm5, %v795_v40, %v811_v45  ;;  %v820_v49 = vsel %vm804_vm6, %v796_v41, %v812_v46  ;;  %v814_v1 = vmul.f32 0.2, %v798_v62  ;;  %vm806_vm9 = vcmp.ge.f32.partialorder %v798_v62, 0.0 }
 0x107   : > { %827 = vxpose.xlu0.b32.start [1/8] (short) (narrow) %v819_v48, 32  ;;  %v872_v53 = vmul.f32 %v1355_v43, %v819_v48  ;;  %v873_v54 = vmul.f32 %v1355_v43, %v820_v49  ;;  %v821_v60 = vsel %vm805_vm7, %v797_v42, %v813_v50  ;;  %v825_v61 = vsel %vm809_vm8, %v801_v44, %v817_v51 }
 0x108   : > { %v874_v63 = vmul.f32 %v1355_v43, %v821_v60  ;;  %v878_v0 = vmul.f32 %v1355_v43, %v825_v61  ;;  %v822_v6 = vsel %vm806_vm9, %v798_v62, %v814_v1  ;;  %v815_v9 = vmul.f32 0.2, %v799_v7 }
 0x109   : > { %v883_v57 = vsel %vm689_vm0, %v873_v54, 0.0  ;;  %v880_v59 = vsel %vm689_vm0, %v872_v53, 0.0  ;;  %v875_v8 = vmul.f32 %v1355_v43, %v822_v6  ;;  %vm807_vm10 = vcmp.ge.f32.partialorder %v799_v7, 0.0 }
 0x10a   : > { %884 = vadd.xlane.f32.xlu2 %v883_v57  ;;  %881 = vadd.xlane.f32.xlu1 %v880_v59  ;;  %v886_v3 = vsel %vm689_vm0, %v874_v63, 0.0  ;;  %v898_v4 = vsel %vm689_vm0, %v878_v0, 0.0  ;;  %v823_v12 = vsel %vm807_vm10, %v799_v7, %v815_v9  ;;  %v816_v18 = vmul.f32 0.2, %v800_v13 }
 0x10b   : > { %v889_v11 = vsel %vm689_vm0, %v875_v8, 0.0  ;;  %v876_v15 = vmul.f32 %v1355_v43, %v823_v12  ;;  %vm808_vm11 = vcmp.ge.f32.partialorder %v800_v13, 0.0  ;;  %v818_v24 = vmul.f32 0.2, %v802_v23 }
 0x10c   : > { %v824_v22 = vsel %vm808_vm11, %v800_v13, %v816_v18  ;;  %vm810_vm12 = vcmp.ge.f32.partialorder %v802_v23, 0.0  ;;  %v927_v30 = vlaneseq  ;;  %v910_v32 = vperm.slane %v908_v28, 0 }
 0x10d   : > { %v892_v20 = vsel %vm689_vm0, %v876_v15, 0.0  ;;  %v877_v19 = vmul.f32 %v1355_v43, %v824_v22  ;;  %v826_v26 = vsel %vm810_vm12, %v802_v23, %v818_v24  ;;  %vm863_vm5 = vcmask 519168  }
 0x10e   : > { %v879_v27 = vmul.f32 %v1355_v43, %v826_v26  ;;  %v928_v33 = vand.u32 127, %v927_v30 }
 0x10f   : > { %828 = vxpose.xlu0.b32.cont [2/8] (short) (narrow) %v820_v49, 32  ;;  %v895_v25 = vsel %vm689_vm0, %v877_v19, 0.0 }
 0x110   : > { %v901_v5 = vsel %vm689_vm0, %v879_v27, 0.0  ;;  %v930_v35 = vadd.s32 4294967288, %v928_v33  ;;  %v934_v37 = vadd.s32 4294967280, %v928_v33  ;;  %v938_v58 = vadd.s32 4294967272, %v928_v33 }
 0x111   : > { %v942_v21 = vadd.s32 4294967264, %v928_v33  ;;  %v946_v43 = vadd.s32 4294967256, %v928_v33  ;;  %vm944_vm0 = vcmask 326912   ;;  %v950_v53 = vadd.s32 4294967248, %v928_v33 }
 0x112   : > { %887 = vadd.xlane.f32.xlu2 %v886_v3  ;;  %899 = vadd.xlane.f32.xlu1 %v898_v4  ;;  %v954_v59 = vadd.s32 4294967240, %v928_v33 }
 0x117   : > { %829 = vxpose.xlu0.b32.cont [3/8] (short) (narrow) %v821_v60, 32 }
 0x11a   : > { %890 = vadd.xlane.f32.xlu2 %v889_v11 }
 0x11f   : > { %830 = vxpose.xlu0.b32.cont [4/8] (short) (narrow) %v822_v6, 32 }
 0x122   : > { %893 = vadd.xlane.f32.xlu2 %v892_v20 }
 0x127   : > { %831 = vxpose.xlu0.b32.cont [5/8] (short) (narrow) %v823_v12, 32 }
 0x12a   : > { %896 = vadd.xlane.f32.xlu2 %v895_v25 }
 0x12f   : > { %832 = vxpose.xlu0.b32.cont [6/8] (short) (narrow) %v824_v22, 32 }
 0x132   : > { %902 = vadd.xlane.f32.xlu2 %v901_v5 }
 0x137   : > { %833 = vxpose.xlu0.b32.cont [7/8] (short) (narrow) %v825_v61, 32 }
 0x13f   : > { %834 = vxpose.xlu0.b32.end [8/8] (short) (narrow) %v826_v26, 32 }
 0x17d   : > { %v885_v14 = vpop.xlane.xlu2 %884  ;;  %v882_v34 = vpop.xlane.xlu1 %881 }
 0x17e   : > { %v912_v36 = vadd.f32 %v910_v32, %v885_v14  ;;  %v911_v55 = vadd.f32 %v910_v32, %v882_v34 }
 0x180   : > { %v931_v41 = vperm.slane %v912_v36, %v930_v35  ;;  %v929_v42 = vperm.slane %v911_v55, %v928_v33 }
 0x182   : > { %v933_v49 = vsel %vm932_vm13, %v931_v41, %v929_v42 }
 0x185   : > { %v888_v16 = vpop.xlane.xlu2 %887  ;;  %v900_v46 = vpop.xlane.xlu1 %899 }
 0x186   : > { %v913_v52 = vadd.f32 %v910_v32, %v888_v16  ;;  %v917_v54 = vadd.f32 %v910_v32, %v900_v46 }
 0x188   : > { %v935_v45 = vperm.slane %v913_v52, %v934_v37  ;;  %v951_v0 = vperm.slane %v917_v54, %v950_v53 }
 0x18a   : > { %v937_v51 = vsel %vm936_vm14, %v935_v45, %v933_v49 }
 0x18d   : > { %v891_v29 = vpop.xlane.xlu2 %890 }
 0x18e   : > { %v914_v38 = vadd.f32 %v910_v32, %v891_v29 }
 0x190   : > { %v939_v47 = vperm.slane %v914_v38, %v938_v58 }
 0x192   : > { %v941_v57 = vsel %vm940_vm15, %v939_v47, %v937_v51 }
 0x195   : > { %v894_v31 = vpop.xlane.xlu2 %893 }
 0x196   : > { %v915_v39 = vadd.f32 %v910_v32, %v894_v31 }
 0x198   : > { %v943_v48 = vperm.slane %v915_v39, %v942_v21 }
 0x19a   : > { %v945_v60 = vsel %vm944_vm0, %v943_v48, %v941_v57 }
 0x19d   : > { %v897_v40 = vpop.xlane.xlu2 %896 }
 0x19e   : > { %v916_v44 = vadd.f32 %v910_v32, %v897_v40 }
 0x1a0   : > { %v947_v50 = vperm.slane %v916_v44, %v946_v43 }
 0x1a2   : > { %v949_v62 = vsel %vm948_vm1, %v947_v50, %v945_v60 }
 0x1a3   : > { %v953_v2 = vsel %vm952_vm2, %v951_v0, %v949_v62 }
 0x1a5   : > { %v903_v61 = vpop.xlane.xlu2 %902 }
 0x1a6   : > { %v918_v63 = vadd.f32 %v910_v32, %v903_v61  ;;  %1351 = vset.pattern.permute.xlu0 %v1400_v56 }
 0x1a8   : > { %v955_v1 = vperm.slane %v918_v63, %v954_v59 }
 0x1aa   : > { %v957_v3 = vsel %vm956_vm3, %v955_v1, %v953_v2 }
 0x1ab   : > { %960 = vst.msk [vmem:[%s450_s28] sm:$0x1] %vm959_vm4, %v957_v3  ;;  %v843_v4 = vpop.trf.xlu0 }
 0x1ac   : > { %v859_v6 = vpack.c.bf16 %v843_v4, %v843_v4 }
 0x1ae   : > { %864 = vst.msk [vmem:[%s443_s18] sm:$0xf] %vm863_vm5, %v859_v6 }
 0x1b3   : > { %v844_v56 = vpop.trf.xlu0 }
 0x1b4   : > { %v860_v7 = vpack.c.bf16 %v844_v56, %v844_v56 }
 0x1b6   : > { %865 = vst.msk [vmem:[%s443_s18 + $0x4] sm:$0xf] %vm863_vm5, %v860_v7 }
 0x1bb   : > { %v845_v8 = vpop.trf.xlu0 }
 0x1bc   : > { %v861_v9 = vpack.c.bf16 %v845_v8, %v845_v8 }
 0x1be   : > { %866 = vst.msk [vmem:[%s443_s18 + $0x8] sm:$0xf] %vm863_vm5, %v861_v9 }
 0x1c3   : > { %v846_v10 = vpop.trf.xlu0 }
 0x1c4   : > { %v862_v11 = vpack.c.bf16 %v846_v10, %v846_v10 }
 0x1c6   : > { %867 = vst.msk [vmem:[%s443_s18 + $0xc] sm:$0xf] %vm863_vm5, %v862_v11 }
 0x1c7 PF: > { %s19_s9 = sadd.s32 1, %s1398_s9   ;;  %s1692_s27 = smov %s1390_s29 }
 0x1c8   : > { %p16_p7 = scmp.ge.s32.totalorder %s19_s9, 6   ;;  %s1693_s28 = smov %s1394_s30 }
 0x1c9   : > { %s1694_s29 = smov %s1697_s10  ;;  %s1695_s30 = smov %s1701_s11 }
 0x1ca   :  { %18 = sbr.rel (!%p16_p7) target bundleno = 3 (0x3), region = 108 }

// kernel: squeeze.8
= control target key start
LH: loop header
LB: loop body
LE: loop exit
PB: predicated region body
PF: predicated region fallthrough
CT: control target
= control target key end

     0   :  { %s130_s0 = inlined_call_operand.vmem [shape: f32[2,64], index: 0, kind: input, shape index: {}]   ;;  %s131_s1 = inlined_call_operand.hbm [shape: f32[2,1,8,8], index: 1, kind: output, shape index: {}]  }
   0x1   :  { %v5_v0 = vld [vmem:[%s130_s0] sm:$0x3] }
   0x2   :  { %6 = vst [vmem:[#allocation2] sm:$0x3] %v5_v0 }
   0x3   :  { %2 = vsyncpa [#allocation1], 0  ;;  %s98_s0 = smov 120   ;;  %s99_s8 = smov 104   ;;  %vm8_vm0 = vcmask 64512  }
   0x4   :  { %s100_s9 = smov 88   ;;  %s101_s10 = smov 112  }
   0x5   :  { %s102_s11 = smov 96   ;;  %s103_s12 = smov 80  }
   0x6   :  { %s104_s13 = smov 72   ;;  %s105_s14 = smov [#allocation0]  }
   0x7   :  { %s55_s15 = sshll.u32 %s105_s14, 4  ;;  %s57_s1 = sshll.u32 %s131_s1, 4  ;;  %s56_s15 = int_to_ptr.vmem [resolvable:$true] %s55_s15  ;;  %s58_s1 = int_to_ptr.hbm [resolvable:$true] %s57_s1 }
   0x9   :  { %v10_v1 = vld [vmem:[#allocation2] sm:$0x3]  }
   0xa   :  { %v22_v2 = vld [vmem:[#allocation2] sm:$0x3]   ;;  %11 = vrot.lane.b32.xlu0 %v10_v1, %s98_s0 }
   0xb   :  { %23 = vrot.lane.b32.xlu1 %v22_v2, %s99_s8  ;;  %v34_v3 = vld [vmem:[#allocation2] sm:$0x3]  }
   0xc   :  { %35 = vrot.lane.b32.xlu2 %v34_v3, %s100_s9  ;;  %v16_v4 = vld [vmem:[#allocation2] sm:$0x3]  }
   0xd   :  { %v28_v5 = vld [vmem:[#allocation2] sm:$0x3]  }
   0xe   :  { %v40_v6 = vld [vmem:[#allocation2] sm:$0x3]  }
   0xf   :  { %v46_v7 = vld [vmem:[#allocation2] sm:$0x3]  }
  0x10   :  { %v7_v9 = vld [vmem:[#allocation2] sm:$0x3]  }
  0x11   :  { %9 = vst.msk [vmem:[#allocation0] ss:$8 sm:$0x3] %vm8_vm0, %v7_v9  }
  0x12   :  { %17 = vrot.lane.b32.xlu0 %v16_v4, %s101_s10 }
  0x13   :  { %29 = vrot.lane.b32.xlu1 %v28_v5, %s102_s11 }
  0x14   :  { %41 = vrot.lane.b32.xlu2 %v40_v6, %s103_s12 }
  0x1a   :  { %47 = vrot.lane.b32.xlu0 %v46_v7, %s104_s13 }
  0x66   :  { %v36_v8 = vpop.permute.xlu2 %35  }
  0x67   :  { %39 = vst.msk [vmem:[#allocation0 + $0x5] ss:$8 sm:$0x3] %vm8_vm0, %v36_v8  }
  0x6e   :  { %v42_v10 = vpop.permute.xlu2 %41  }
  0x6f   :  { %45 = vst.msk [vmem:[#allocation0 + $0x6] ss:$8 sm:$0x3] %vm8_vm0, %v42_v10  }
  0x7c   :  { %v12_v11 = vpop.permute.xlu0 %11  }
  0x7d   :  { %v24_v12 = vpop.permute.xlu1 %23   ;;  %15 = vst.msk [vmem:[#allocation0 + $0x1] ss:$8 sm:$0x3] %vm8_vm0, %v12_v11  }
  0x7e   :  { %27 = vst.msk [vmem:[#allocation0 + $0x3] ss:$8 sm:$0x3] %vm8_vm0, %v24_v12  }
  0x84   :  { %v18_v13 = vpop.permute.xlu0 %17  }
  0x85   :  { %v30_v14 = vpop.permute.xlu1 %29   ;;  %21 = vst.msk [vmem:[#allocation0 + $0x2] ss:$8 sm:$0x3] %vm8_vm0, %v18_v13  }
  0x86   :  { %33 = vst.msk [vmem:[#allocation0 + $0x4] ss:$8 sm:$0x3] %vm8_vm0, %v30_v14  }
  0x8c   :  { %v48_v15 = vpop.permute.xlu0 %47  }
  0x8d   :  { %51 = vst.msk [vmem:[#allocation0 + $0x7] ss:$8 sm:$0x3] %vm8_vm0, %v48_v15  }
  0x8e   :  { %60 = dma.vmem_to_hbm [thread:$0]  %s56_s15, 256, %s58_s1, [#allocation1]  }
  0x8f   :  { %96 = dma.done.wait [#allocation1], 256  }
  0x90   :  { %97 = vsyncadd [#allocation1], 4294967040 }
  0x91   :  { %63 = vsyncpa [#allocation1], 1 }

</bundles_post_ra>
